<compile_context>
chip_gen: v7x
topology: tpu7x:2x2x1
jax: 0.10.0
libtpu: 0.0.40
codegen_flags: <defaults>
</compile_context>

<pallas_src>
import functools

import jax
import jax.numpy as jnp
from jax.experimental import pallas as pl
from jax.experimental.pallas import tpu as pltpu

LANE = 128  # vreg lane width


def _round_up(x, m):
    return (x + m - 1) // m * m


def _mxu_row_cap():
    """256-row LHS tiles on 256-wide MXUs (v6e/v7x); 128 on v5e and older."""
    try:
        kind = jax.devices()[0].device_kind.lower()
    except Exception:
        return 128
    if "v6" in kind or "v7" in kind:
        return 256
    return 128


def actor_kernel(x_ref, w1_ref, b1_ref, w2_ref, b2_ref, w3_ref, b3_ref, o_ref):
    # In-kernel bf16 cast of the f32 activations (VPU work hidden under the
    # weight DMA); fc1 + ReLU with f32 MXU accumulation.
    x = x_ref[...].astype(jnp.bfloat16)
    h1 = jnp.dot(x, w1_ref[...], preferred_element_type=jnp.float32) + b1_ref[...]
    h1 = jnp.maximum(h1, 0.0).astype(jnp.bfloat16)
    # fc2 + ReLU
    h2 = jnp.dot(h1, w2_ref[...], preferred_element_type=jnp.float32) + b2_ref[...]
    h2 = jnp.maximum(h2, 0.0).astype(jnp.bfloat16)
    # fc3 + softmax over the lane-padded output axis.  Padded columns carry a
    # -1e30 bias, so exp() underflows to 0 and they vanish from the row sum.
    logits = jnp.dot(h2, w3_ref[...], preferred_element_type=jnp.float32) + b3_ref[...]
    m = jnp.max(logits, axis=-1, keepdims=True)
    e = jnp.exp(logits - m)
    s = jnp.sum(e, axis=-1, keepdims=True)
    # Exact normalization (policy probabilities); divide cost is negligible here.
    o_ref[...] = e / s


@functools.partial(jax.jit, static_argnames=("output_size",))
def actor_net_forward(x_nchw, params, *, output_size):
    """x_nchw: (B, C, H, W) float32.  params: kernel-layout dict (see prepare_params)."""
    B = x_nchw.shape[0]
    F = x_nchw.shape[1] * x_nchw.shape[2] * x_nchw.shape[3]

    w1, b1 = params["w1"], params["b1"]   # (F, H1)  bf16, (1, H1)   f32
    w2, b2 = params["w2"], params["b2"]   # (H1, H2) bf16, (1, H2)   f32
    w3, b3 = params["w3"], params["b3"]   # (H2, O_pad) bf16, (1, O_pad) f32 (-1e30 on pad)
    H1, H2, OPAD = w1.shape[1], w2.shape[1], w3.shape[1]

    # feature_extractor == flatten, row-major like torch .view(B, -1).
    # Stays f32: the bf16 cast happens inside the kernel (no extra HBM pass).
    feats = x_nchw.reshape(B, F)

    # Batch tiling: multiple of 8 sublanes, capped per-chip (128 v5e / 256 v6e+).
    # Weights stay VMEM-resident across batch tiles (constant index_map).
    block_m = min(_mxu_row_cap(), _round_up(B, 8))
    grid = (pl.cdiv(B, block_m),)  # partial last tile handled by Pallas; no jnp.pad

    out = pl.pallas_call(
        actor_kernel,
        out_shape=jax.ShapeDtypeStruct((B, OPAD), jnp.float32),
        grid=grid,
        in_specs=[
            pl.BlockSpec((block_m, F), lambda i: (i, 0)),   # x tile (f32)
            pl.BlockSpec((F, H1), lambda i: (0, 0)),        # w1 (resident)
            pl.BlockSpec((1, H1), lambda i: (0, 0)),        # b1
            pl.BlockSpec((H1, H2), lambda i: (0, 0)),       # w2
            pl.BlockSpec((1, H2), lambda i: (0, 0)),        # b2
            pl.BlockSpec((H2, OPAD), lambda i: (0, 0)),     # w3 (lane-padded)
            pl.BlockSpec((1, OPAD), lambda i: (0, 0)),      # b3 (-1e30 on pad)
        ],
        out_specs=pl.BlockSpec((block_m, OPAD), lambda i: (i, 0)),
        compiler_params=pltpu.CompilerParams(dimension_semantics=("parallel",)),
    )(feats, w1, b1, w2, b2, w3, b3)

    # Lane-dense 128-wide slab from the kernel; tiny slice outside (skip it if
    # the consumer can take the padded slab directly, e.g. argmax/sampling).
    return out[:, :output_size]


def torch_linear_init(kw, kb, fan_in, fan_out):
    """nn.Linear-style init, weights stored torch-style as (out, in), f32."""
    bound = 1.0 / jnp.sqrt(fan_in)
    w = jax.random.uniform(kw, (fan_out, fan_in), jnp.float32, -bound, bound)
    b = jax.random.uniform(kb, (fan_out,), jnp.float32, -bound, bound)
    return w, b


def prepare_params(raw, output_size):
    """One-time conversion to kernel layout:
    weights transposed to (in, out) + cast to bf16; biases as (1, out) f32;
    fc3 padded to a 128-lane output slab (zero weight cols, -1e30 bias)."""
    out_pad = _round_up(output_size, LANE)
    w3t = raw["w3"].T  # (H2, O)
    w3p = jnp.zeros((w3t.shape[0], out_pad), jnp.float32).at[:, :output_size].set(w3t)
    b3p = jnp.full((1, out_pad), -1e30, jnp.float32).at[0, :output_size].set(raw["b3"])
    return {
        "w1": raw["w1"].T.astype(jnp.bfloat16),
        "b1": raw["b1"].reshape(1, -1).astype(jnp.float32),
        "w2": raw["w2"].T.astype(jnp.bfloat16),
        "b2": raw["b2"].reshape(1, -1).astype(jnp.float32),
        "w3": w3p.astype(jnp.bfloat16),
        "b3": b3p,
    }


def actor_net_reference(x_nchw, kparams, output_size):
    """Pure-JAX reference mirroring the PyTorch forward with the same bf16
    weights / f32 accumulation as the kernel."""
    B = x_nchw.shape[0]
    x = x_nchw.reshape(B, -1).astype(jnp.bfloat16)
    h1 = jnp.maximum(
        jnp.dot(x, kparams["w1"], preferred_element_type=jnp.float32) + kparams["b1"], 0.0
    ).astype(jnp.bfloat16)
    h2 = jnp.maximum(
        jnp.dot(h1, kparams["w2"], preferred_element_type=jnp.float32) + kparams["b2"], 0.0
    ).astype(jnp.bfloat16)
    logits = jnp.dot(h2, kparams["w3"], preferred_element_type=jnp.float32) + kparams["b3"]
    return jax.nn.softmax(logits[:, :output_size], axis=1)


if __name__ == "__main__":
    # Small shapes consistent with the module: image-like NCHW input, flattened
    # features feed fc1.  B=2, C=4, H=W=16 -> feature_size = 1024.
    B, C, H, W = 2, 4, 16, 16
    feature_size = C * H * W
    hidden1, hidden2 = 512, 512
    output_size = 8

    key = jax.random.PRNGKey(0)
    kx, k1, k2, k3, k4, k5, k6 = jax.random.split(key, 7)
    x = jax.random.normal(kx, (B, C, H, W), dtype=jnp.float32)

    w1, b1 = torch_linear_init(k1, k2, feature_size, hidden1)
    w2, b2 = torch_linear_init(k3, k4, hidden1, hidden2)
    w3, b3 = torch_linear_init(k5, k6, hidden2, output_size)
    raw = {"w1": w1, "b1": b1, "w2": w2, "b2": b2, "w3": w3, "b3": b3}
    params = prepare_params(raw, output_size)

    out = jax.block_until_ready(actor_net_forward(x, params, output_size=output_size))
    ref = jax.block_until_ready(actor_net_reference(x, params, output_size))

    assert out.shape == (B, output_size)
    # Exact divide in the epilogue => rows sum to 1 up to f32 rounding.
    assert jnp.allclose(jnp.sum(out, axis=1), 1.0, atol=1e-4)
    assert jnp.allclose(out, ref, atol=1e-2, rtol=1e-2)

    print("KERNEL_OK")
</pallas_src>

<mosaic_0001>
module attributes {stable_mosaic.version = 11 : i64} {
  func.func @actor_kernel(%arg0: i32, %arg1: memref<8x1024xf32, #tpu.memory_space<vmem>>, %arg2: memref<1024x512xbf16, #tpu.memory_space<vmem>>, %arg3: memref<1x512xf32, #tpu.memory_space<vmem>>, %arg4: memref<512x512xbf16, #tpu.memory_space<vmem>>, %arg5: memref<1x512xf32, #tpu.memory_space<vmem>>, %arg6: memref<512x128xbf16, #tpu.memory_space<vmem>>, %arg7: memref<1x128xf32, #tpu.memory_space<vmem>>, %arg8: memref<8x128xf32, #tpu.memory_space<vmem>>) attributes {dimension_semantics = [#tpu.dimension_semantics<parallel>], iteration_bounds = array<i64: 1>, scalar_prefetch = 0 : i64, scratch_operands = 0 : i64, tpu.core_type = #tpu.core_type<tc>, window_params = [{transform_indices = @transform_0, window_bounds = array<i64: 8, 1024>}, {pipeline_mode = #tpu.pipeline_mode<synchronous>, transform_indices = @transform_1, window_bounds = array<i64: 1024, 512>}, {pipeline_mode = #tpu.pipeline_mode<synchronous>, transform_indices = @transform_2, window_bounds = array<i64: 1, 512>}, {pipeline_mode = #tpu.pipeline_mode<synchronous>, transform_indices = @transform_3, window_bounds = array<i64: 512, 512>}, {pipeline_mode = #tpu.pipeline_mode<synchronous>, transform_indices = @transform_4, window_bounds = array<i64: 1, 512>}, {pipeline_mode = #tpu.pipeline_mode<synchronous>, transform_indices = @transform_5, window_bounds = array<i64: 512, 128>}, {pipeline_mode = #tpu.pipeline_mode<synchronous>, transform_indices = @transform_6, window_bounds = array<i64: 1, 128>}, {transform_indices = @transform_7, window_bounds = array<i64: 8, 128>}]} {
    %c0 = arith.constant 0 : index
    %c0_0 = arith.constant 0 : index
    %0 = vector.load %arg1[%c0, %c0_0] : memref<8x1024xf32, #tpu.memory_space<vmem>>, vector<8x1024xf32>
    %1 = arith.truncf %0 : vector<8x1024xf32> to vector<8x1024xbf16>
    %c0_1 = arith.constant 0 : index
    %c0_2 = arith.constant 0 : index
    %2 = vector.load %arg2[%c0_1, %c0_2] : memref<1024x512xbf16, #tpu.memory_space<vmem>>, vector<1024x512xbf16>
    %cst = arith.constant dense<0.000000e+00> : vector<8x512xf32>
    %3 = tpu.matmul %1, %2, %cst {dimension_numbers = #tpu.dot_dimension_numbers<[1], [0], [0], [1], [0, 0, 1, 1], [], []>} : vector<8x1024xbf16>, vector<1024x512xbf16>, vector<8x512xf32> -> vector<8x512xf32>
    %c0_3 = arith.constant 0 : index
    %c0_4 = arith.constant 0 : index
    %4 = vector.load %arg3[%c0_3, %c0_4] : memref<1x512xf32, #tpu.memory_space<vmem>>, vector<1x512xf32>
    %5 = vector.broadcast %4 : vector<1x512xf32> to vector<8x512xf32>
    %6 = arith.addf %3, %5 : vector<8x512xf32>
    %cst_5 = arith.constant 0.000000e+00 : f32
    %7 = vector.broadcast %cst_5 : f32 to vector<8x512xf32>
    %8 = arith.maximumf %6, %7 : vector<8x512xf32>
    %9 = arith.truncf %8 : vector<8x512xf32> to vector<8x512xbf16>
    %c0_6 = arith.constant 0 : index
    %c0_7 = arith.constant 0 : index
    %10 = vector.load %arg4[%c0_6, %c0_7] : memref<512x512xbf16, #tpu.memory_space<vmem>>, vector<512x512xbf16>
    %cst_8 = arith.constant dense<0.000000e+00> : vector<8x512xf32>
    %11 = tpu.matmul %9, %10, %cst_8 {dimension_numbers = #tpu.dot_dimension_numbers<[1], [0], [0], [1], [0, 0, 1, 1], [], []>} : vector<8x512xbf16>, vector<512x512xbf16>, vector<8x512xf32> -> vector<8x512xf32>
    %c0_9 = arith.constant 0 : index
    %c0_10 = arith.constant 0 : index
    %12 = vector.load %arg5[%c0_9, %c0_10] : memref<1x512xf32, #tpu.memory_space<vmem>>, vector<1x512xf32>
    %13 = vector.broadcast %12 : vector<1x512xf32> to vector<8x512xf32>
    %14 = arith.addf %11, %13 : vector<8x512xf32>
    %cst_11 = arith.constant 0.000000e+00 : f32
    %15 = vector.broadcast %cst_11 : f32 to vector<8x512xf32>
    %16 = arith.maximumf %14, %15 : vector<8x512xf32>
    %17 = arith.truncf %16 : vector<8x512xf32> to vector<8x512xbf16>
    %c0_12 = arith.constant 0 : index
    %c0_13 = arith.constant 0 : index
    %18 = vector.load %arg6[%c0_12, %c0_13] : memref<512x128xbf16, #tpu.memory_space<vmem>>, vector<512x128xbf16>
    %cst_14 = arith.constant dense<0.000000e+00> : vector<8x128xf32>
    %19 = tpu.matmul %17, %18, %cst_14 {dimension_numbers = #tpu.dot_dimension_numbers<[1], [0], [0], [1], [0, 0, 1, 1], [], []>} : vector<8x512xbf16>, vector<512x128xbf16>, vector<8x128xf32> -> vector<8x128xf32>
    %c0_15 = arith.constant 0 : index
    %c0_16 = arith.constant 0 : index
    %20 = vector.load %arg7[%c0_15, %c0_16] : memref<1x128xf32, #tpu.memory_space<vmem>>, vector<1x128xf32>
    %21 = vector.broadcast %20 : vector<1x128xf32> to vector<8x128xf32>
    %22 = arith.addf %19, %21 : vector<8x128xf32>
    %cst_17 = arith.constant dense<0xFF800000> : vector<8xf32>
    %23 = vector.multi_reduction <maximumf>, %22, %cst_17 [1] : vector<8x128xf32> to vector<8xf32>
    %24 = vector.shape_cast %23 : vector<8xf32> to vector<8x1xf32>
    %25 = vector.broadcast %24 : vector<8x1xf32> to vector<8x128xf32>
    %26 = arith.subf %22, %25 : vector<8x128xf32>
    %27 = math.exp %26 : vector<8x128xf32>
    %cst_18 = arith.constant dense<0.000000e+00> : vector<8xf32>
    %28 = vector.multi_reduction <add>, %27, %cst_18 [1] : vector<8x128xf32> to vector<8xf32>
    %29 = vector.shape_cast %28 : vector<8xf32> to vector<8x1xf32>
    %30 = vector.broadcast %29 : vector<8x1xf32> to vector<8x128xf32>
    %31 = arith.divf %27, %30 : vector<8x128xf32>
    %c0_19 = arith.constant 0 : index
    %c0_20 = arith.constant 0 : index
    %32 = vector.load %arg8[%c0_19, %c0_20] : memref<8x128xf32, #tpu.memory_space<vmem>>, vector<8x128xf32>
    tpu.vector_store %arg8[%c0_19, %c0_20], %31 {strides = array<i32>} : memref<8x128xf32, #tpu.memory_space<vmem>>, vector<8x128xf32>,
    return
  }
  func.func @transform_0(%arg0: i32) -> (i32, i32) {
    %c0_i32 = arith.constant 0 : i32
    %c0_i32_0 = arith.constant 0 : i32
    return %arg0, %c0_i32 : i32, i32
  }
  func.func @transform_1(%arg0: i32) -> (i32, i32) {
    %c0_i32 = arith.constant 0 : i32
    %c0_i32_0 = arith.constant 0 : i32
    %c0_i32_1 = arith.constant 0 : i32
    return %c0_i32, %c0_i32_0 : i32, i32
  }
  func.func @transform_2(%arg0: i32) -> (i32, i32) {
    %c0_i32 = arith.constant 0 : i32
    %c0_i32_0 = arith.constant 0 : i32
    %c0_i32_1 = arith.constant 0 : i32
    return %c0_i32, %c0_i32_0 : i32, i32
  }
  func.func @transform_3(%arg0: i32) -> (i32, i32) {
    %c0_i32 = arith.constant 0 : i32
    %c0_i32_0 = arith.constant 0 : i32
    %c0_i32_1 = arith.constant 0 : i32
    return %c0_i32, %c0_i32_0 : i32, i32
  }
  func.func @transform_4(%arg0: i32) -> (i32, i32) {
    %c0_i32 = arith.constant 0 : i32
    %c0_i32_0 = arith.constant 0 : i32
    %c0_i32_1 = arith.constant 0 : i32
    return %c0_i32, %c0_i32_0 : i32, i32
  }
  func.func @transform_5(%arg0: i32) -> (i32, i32) {
    %c0_i32 = arith.constant 0 : i32
    %c0_i32_0 = arith.constant 0 : i32
    %c0_i32_1 = arith.constant 0 : i32
    return %c0_i32, %c0_i32_0 : i32, i32
  }
  func.func @transform_6(%arg0: i32) -> (i32, i32) {
    %c0_i32 = arith.constant 0 : i32
    %c0_i32_0 = arith.constant 0 : i32
    %c0_i32_1 = arith.constant 0 : i32
    return %c0_i32, %c0_i32_0 : i32, i32
  }
  func.func @transform_7(%arg0: i32) -> (i32, i32) {
    %c0_i32 = arith.constant 0 : i32
    %c0_i32_0 = arith.constant 0 : i32
    return %arg0, %c0_i32 : i32, i32
  }
}

</mosaic_0001>

<bundles_post_ra>
// kernel: actor_net_forward.1
= control target key start
LH: loop header
LB: loop body
LE: loop exit
PB: predicated region body
PF: predicated region fallthrough
CT: control target
= control target key end

     0   :  { %12 = vsyncpa [#allocation3], 0  ;;  %s4835_s0 = inlined_call_operand.vmem [shape: f32[2,1024], index: 0, kind: input, shape index: {}]   ;;  %s4836_s1 = inlined_call_operand.hbm [shape: bf16[1024,512], index: 1, kind: input, shape index: {}]   ;;  %s4837_s2 = inlined_call_operand.vmem [shape: f32[1,512], index: 2, kind: input, shape index: {}]   ;;  %s4838_s3 = inlined_call_operand.hbm [shape: bf16[512,512], index: 3, kind: input, shape index: {}]   ;;  %s4839_s4 = inlined_call_operand.vmem [shape: f32[1,512], index: 4, kind: input, shape index: {}]   ;;  %s4840_s5 = inlined_call_operand.hbm [shape: bf16[512,128], index: 5, kind: input, shape index: {}]   ;;  %s4841_s6 = inlined_call_operand.vmem [shape: f32[1,128], index: 6, kind: input, shape index: {}]   ;;  %s4842_s7 = inlined_call_operand.hbm [shape: f32[2,128], index: 7, kind: output, shape index: {}]  }
   0x1   :  { %13 = vsyncpa [#allocation6], 0 }
   0x2   :  { %14 = vsyncpa [#allocation4], 0  ;;  %s4630_s24 = smov [#allocation5]   ;;  %s4631_s26 = smov [#allocation2]  }
   0x3   :  { %s36_s25 = sshll.u32 %s4630_s24, 4  ;;  %s22_s27 = sshll.u32 %s4631_s26, 4  ;;  %s37_s25 = int_to_ptr.vmem [resolvable:$true] %s36_s25  ;;  %s4681_s27 = int_to_ptr.vmem [resolvable:$true] %s22_s27 }
   0x4   :  { %s4536_s30 = scalar_lea.hbm %s4838_s3, 16384 }
   0x5   :  { %p4537_p0 = scmp.ne.s32.totalorder %s4838_s3, %s4536_s30  ;;  %p4540_p1 = scmp.lt.u32.totalorder %s4536_s30, %s4838_s3 }
   0x7   :  { %p4542_p2 = pnand %p4540_p1, %p4537_p0 }
   0x9   :  { %4545 = shalt.err (!%p4542_p2)
}
   0xa   :  { %s4546_s12 = scalar_lea.vmem %s37_s25, 16384  ;;  %p4551_p4 = scmp.lt.s32.totalorder %s37_s25, %s37_s25 }
   0xb   :  { %p4547_p3 = scmp.ne.s32.totalorder %s37_s25, %s4546_s12  ;;  %p4552_p5 = scmp.lt.s32.totalorder %s4546_s12, %s4546_s12 }
   0xd   :  { %p4553_p6 = por %p4552_p5, %p4551_p4 }
   0xf   :  { %p4554_p7 = pnand %p4553_p6, %p4547_p3 }
  0x11   :  { %4557 = shalt.err (!%p4554_p7)
}
  0x12   :  { %s4632_s13 = smov 256   ;;  %s4633_s14 = smov 16  }
  0x13   :  { %42 = dma.hbm_to_vmem [thread:$0]  %s4838_s3, 16384, %s37_s25, [#allocation6], %s4632_s13, %s4632_s13, %s4633_s14  }
  0x14   :  { %s4558_s19 = scalar_lea.hbm %s4836_s1, 32768 }
  0x15   :  { %p4559_p8 = scmp.ne.s32.totalorder %s4836_s1, %s4558_s19  ;;  %p4562_p9 = scmp.lt.u32.totalorder %s4558_s19, %s4836_s1 }
  0x17   :  { %p4564_p10 = pnand %p4562_p9, %p4559_p8 }
  0x19   :  { %4567 = shalt.err (!%p4564_p10)
}
  0x1a   :  { %s4568_s24 = scalar_lea.vmem %s4681_s27, 32768  ;;  %p4573_p12 = scmp.lt.s32.totalorder %s4681_s27, %s4681_s27 }
  0x1b   :  { %p4569_p11 = scmp.ne.s32.totalorder %s4681_s27, %s4568_s24  ;;  %p4574_p13 = scmp.lt.s32.totalorder %s4568_s24, %s4568_s24 }
  0x1d   :  { %p4575_p0 = por %p4574_p13, %p4573_p12 }
  0x1f   :  { %p4576_p1 = pnand %p4575_p0, %p4569_p11 }
  0x21   :  { %4579 = shalt.err (!%p4576_p1)
}
  0x22   :  { %28 = dma.hbm_to_vmem [thread:$0]  %s4836_s1, 32768, %s4681_s27, [#allocation3], %s4632_s13, %s4632_s13, %s4633_s14  }
  0x23   :  { %s4634_s26 = smov [#allocation7]   ;;  %s4580_s8 = scalar_lea.hbm %s4840_s5, 4096 }
  0x24   :  { %s50_s28 = sshll.u32 %s4634_s26, 4  ;;  %p4581_p2 = scmp.ne.s32.totalorder %s4840_s5, %s4580_s8  ;;  %s51_s28 = int_to_ptr.vmem [resolvable:$true] %s50_s28 }
  0x25   :  { %p4584_p3 = scmp.lt.u32.totalorder %s4580_s8, %s4840_s5 }
  0x27   :  { %p4586_p4 = pnand %p4584_p3, %p4581_p2 }
  0x29   :  { %4589 = shalt.err (!%p4586_p4)
}
  0x2a   :  { %s4590_s15 = scalar_lea.vmem %s51_s28, 4096  ;;  %p4595_p6 = scmp.lt.s32.totalorder %s51_s28, %s51_s28 }
  0x2b   :  { %p4591_p5 = scmp.ne.s32.totalorder %s51_s28, %s4590_s15  ;;  %p4596_p7 = scmp.lt.s32.totalorder %s4590_s15, %s4590_s15 }
  0x2d   :  { %p4597_p8 = por %p4596_p7, %p4595_p6 }
  0x2f   :  { %p4598_p9 = pnand %p4597_p8, %p4591_p5 }
  0x31   :  { %4601 = shalt.err (!%p4598_p9)
}
  0x32   :  { %s4635_s1 = smov 64   ;;  %s4636_s27 = smov 4  }
  0x33   :  { %56 = dma.hbm_to_vmem [thread:$0]  %s4840_s5, 4096, %s51_s28, [#allocation6], %s4635_s1, %s4635_s1, %s4636_s27  }
  0x34   :  { %4624 = dma.done.wait [#allocation3], 32768  }
  0x35   :  { %4625 = vsyncadd [#allocation3], 4294934528 }
  0x36   :  { %4626 = dma.done.wait [#allocation6], 20480  }
  0x37   :  { %4627 = vsyncadd [#allocation6], 4294946816  ;;  %v3912_v0 = vld [vmem:[#allocation2 + $0x4] ss:$16 sps:$4 sm:$0xff]   ;;  %v3914_v1 = vld [vmem:[#allocation2 + $0xc] ss:$16 sps:$4 sm:$0xff]   ;;  %v92_v40 = vlaneseq }
  0x38   :  { %1731 = vmatprep.subr.bf16.mxu0 %v3912_v0  ;;  %v3916_v2 = vld [vmem:[#allocation2] ss:$16 sps:$4 sm:$0xff]   ;;  %v3917_v3 = vld [vmem:[#allocation2 + $0x8] ss:$16 sps:$4 sm:$0xff]   ;;  %1895 = vmatprep.subr.bf16.mxu1 %v3914_v1  ;;  %v3918_v4 = vld [vmem:[#allocation2 + $0x24] ss:$16 sps:$4 sm:$0xff]  }
  0x39   :  { %1732 = vmatpush1.bf16.msra.mxu0 %v3916_v2  ;;  %1896 = vmatpush1.bf16.msra.mxu1 %v3917_v3  ;;  %v3920_v5 = vld [vmem:[#allocation2 + $0x2c] ss:$16 sps:$4 sm:$0xff]   ;;  %v3922_v6 = vld [vmem:[#allocation2 + $0x20] ss:$16 sps:$4 sm:$0xff]   ;;  %v3923_v7 = vld [vmem:[#allocation2 + $0x28] ss:$16 sps:$4 sm:$0xff]  }
  0x3a   :  { %1733 = vmatprep.subr.bf16.mxu0 %v3918_v4  ;;  %1897 = vmatprep.subr.bf16.mxu1 %v3920_v5  ;;  %v3924_v8 = vld [vmem:[#allocation2 + $0x44] ss:$16 sps:$4 sm:$0xff]   ;;  %v3926_v9 = vld [vmem:[#allocation2 + $0x4c] ss:$16 sps:$4 sm:$0xff]   ;;  %v3928_v10 = vld [vmem:[#allocation2 + $0x40] ss:$16 sps:$4 sm:$0xff]  }
  0x3b   :  { %v3929_v11 = vld [vmem:[#allocation2 + $0x48] ss:$16 sps:$4 sm:$0xff]   ;;  %v3930_v12 = vld [vmem:[#allocation2 + $0x64] ss:$16 sps:$4 sm:$0xff]   ;;  %v3932_v13 = vld [vmem:[#allocation2 + $0x6c] ss:$16 sps:$4 sm:$0xff]  }
  0x3c   :  { %v3934_v14 = vld [vmem:[#allocation2 + $0x60] ss:$16 sps:$4 sm:$0xff]   ;;  %v3935_v15 = vld [vmem:[#allocation2 + $0x68] ss:$16 sps:$4 sm:$0xff]   ;;  %v3936_v16 = vld [vmem:[#allocation2 + $0x84] ss:$16 sps:$4 sm:$0xff]  }
  0x3d   :  { %1734 = vmatpush1.bf16.msra.mxu0 %v3922_v6  ;;  %1898 = vmatpush1.bf16.msra.mxu1 %v3923_v7  ;;  %v3938_v17 = vld [vmem:[#allocation2 + $0x8c] ss:$16 sps:$4 sm:$0xff]   ;;  %v3940_v18 = vld [vmem:[#allocation2 + $0x80] ss:$16 sps:$4 sm:$0xff]   ;;  %v3941_v19 = vld [vmem:[#allocation2 + $0x88] ss:$16 sps:$4 sm:$0xff]  }
  0x3e   :  { %1735 = vmatprep.subr.bf16.mxu0 %v3924_v8  ;;  %1899 = vmatprep.subr.bf16.mxu1 %v3926_v9  ;;  %v3942_v20 = vld [vmem:[#allocation2 + $0xa4] ss:$16 sps:$4 sm:$0xff]   ;;  %v3944_v21 = vld [vmem:[#allocation2 + $0xac] ss:$16 sps:$4 sm:$0xff]   ;;  %v3946_v22 = vld [vmem:[#allocation2 + $0xa0] ss:$16 sps:$4 sm:$0xff]  }
  0x3f   :  { %v3947_v23 = vld [vmem:[#allocation2 + $0xa8] ss:$16 sps:$4 sm:$0xff]   ;;  %v3948_v24 = vld [vmem:[#allocation2 + $0xc4] ss:$16 sps:$4 sm:$0xff]   ;;  %v3950_v25 = vld [vmem:[#allocation2 + $0xcc] ss:$16 sps:$4 sm:$0xff]  }
  0x40   :  { %v3952_v26 = vld [vmem:[#allocation2 + $0xc0] ss:$16 sps:$4 sm:$0xff]   ;;  %v3953_v27 = vld [vmem:[#allocation2 + $0xc8] ss:$16 sps:$4 sm:$0xff]   ;;  %v3954_v28 = vld [vmem:[#allocation2 + $0xe4] ss:$16 sps:$4 sm:$0xff]  }
  0x41   :  { %1736 = vmatpush1.bf16.msra.mxu0 %v3928_v10  ;;  %1900 = vmatpush1.bf16.msra.mxu1 %v3929_v11  ;;  %v3956_v29 = vld [vmem:[#allocation2 + $0xec] ss:$16 sps:$4 sm:$0xff]   ;;  %v3958_v30 = vld [vmem:[#allocation2 + $0xe0] ss:$16 sps:$4 sm:$0xff]   ;;  %v3959_v31 = vld [vmem:[#allocation2 + $0xe8] ss:$16 sps:$4 sm:$0xff]  }
  0x42   :  { %1737 = vmatprep.subr.bf16.mxu0 %v3930_v12  ;;  %1901 = vmatprep.subr.bf16.mxu1 %v3932_v13  ;;  %v3960_v32 = vld [vmem:[#allocation2 + $0x104] ss:$16 sps:$4 sm:$0xff]   ;;  %v3962_v33 = vld [vmem:[#allocation2 + $0x10c] ss:$16 sps:$4 sm:$0xff]   ;;  %v3964_v34 = vld [vmem:[#allocation2 + $0x100] ss:$16 sps:$4 sm:$0xff]  }
  0x43   :  { %v3965_v35 = vld [vmem:[#allocation2 + $0x108] ss:$16 sps:$4 sm:$0xff]   ;;  %v3966_v36 = vld [vmem:[#allocation2 + $0x124] ss:$16 sps:$4 sm:$0xff]   ;;  %v3968_v37 = vld [vmem:[#allocation2 + $0x12c] ss:$16 sps:$4 sm:$0xff]  }
  0x44   :  { %v4637_v38 = vmov 1983009808   ;;  %v3970_v41 = vld [vmem:[#allocation2 + $0x120] ss:$16 sps:$4 sm:$0xff]   ;;  %v3971_v42 = vld [vmem:[#allocation2 + $0x128] ss:$16 sps:$4 sm:$0xff]  }
  0x45   :  { %1738 = vmatpush1.bf16.msra.mxu0 %v3934_v14  ;;  %1902 = vmatpush1.bf16.msra.mxu1 %v3935_v15  ;;  %v90_v39 = vunpack.c.l.s4 %v4637_v38  ;;  %v3972_v43 = vld [vmem:[#allocation2 + $0x144] ss:$16 sps:$4 sm:$0xff]   ;;  %v3974_v44 = vld [vmem:[#allocation2 + $0x14c] ss:$16 sps:$4 sm:$0xff]   ;;  %v4724_v46 = vshrl.u32 %v92_v40, 7 }
  0x46   :  { %1739 = vmatprep.subr.bf16.mxu0 %v3936_v16  ;;  %1903 = vmatprep.subr.bf16.mxu1 %v3938_v17  ;;  %v3976_v47 = vld [vmem:[#allocation2 + $0x140] ss:$16 sps:$4 sm:$0xff]   ;;  %v3977_v48 = vld [vmem:[#allocation2 + $0x148] ss:$16 sps:$4 sm:$0xff]   ;;  %v3978_v49 = vld [vmem:[#allocation2 + $0x164] ss:$16 sps:$4 sm:$0xff]  }
  0x47   :  { %v91_v45 = vunpack.c.0.s8 %v90_v39  ;;  %v3980_v50 = vld [vmem:[#allocation2 + $0x16c] ss:$16 sps:$4 sm:$0xff]   ;;  %v3982_v51 = vld [vmem:[#allocation2 + $0x160] ss:$16 sps:$4 sm:$0xff]   ;;  %v3983_v52 = vld [vmem:[#allocation2 + $0x168] ss:$16 sps:$4 sm:$0xff]  }
  0x48   :  { %v3984_v54 = vld [vmem:[#allocation2 + $0x184] ss:$16 sps:$4 sm:$0xff]   ;;  %v4008_v55 = vld [vmem:[%s4835_s0] ss:$16 sps:$4 sm:$0xff]   ;;  %v3986_v57 = vld [vmem:[#allocation2 + $0x18c] ss:$16 sps:$4 sm:$0xff]  }
  0x49   :  { %1740 = vmatpush1.bf16.msra.mxu0 %v3940_v18  ;;  %1904 = vmatpush1.bf16.msra.mxu1 %v3941_v19  ;;  %v4727_v53 = vsub.s32 %v91_v45, %v4724_v46  ;;  %v4011_v56 = vld [vmem:[%s4835_s0 + $0x20] ss:$16 sps:$4 sm:$0xff]   ;;  %v3989_v61 = vld [vmem:[#allocation2 + $0x188] ss:$16 sps:$4 sm:$0xff]   ;;  %v3990_v62 = vld [vmem:[#allocation2 + $0x1a4] ss:$16 sps:$4 sm:$0xff]  }
  0x4a   :  { %1741 = vmatprep.subr.bf16.mxu0 %v3942_v20  ;;  %1905 = vmatprep.subr.bf16.mxu1 %v3944_v21  ;;  %v3988_v60 = vld [vmem:[#allocation2 + $0x180] ss:$16 sps:$4 sm:$0xff]   ;;  %v3992_v0 = vld [vmem:[#allocation2 + $0x1ac] ss:$16 sps:$4 sm:$0xff]   ;;  %v3995_v3 = vld [vmem:[#allocation2 + $0x1a8] ss:$16 sps:$4 sm:$0xff]  }
  0x4b   :  { %v95_v58 = vrot.slane %v4008_v55, %v4727_v53  ;;  %v109_v59 = vrot.slane %v4011_v56, %v4727_v53  ;;  %v3994_v2 = vld [vmem:[#allocation2 + $0x1a0] ss:$16 sps:$4 sm:$0xff]   ;;  %v3996_v4 = vld [vmem:[#allocation2 + $0x1c4] ss:$16 sps:$4 sm:$0xff]   ;;  %v3998_v5 = vld [vmem:[#allocation2 + $0x1cc] ss:$16 sps:$4 sm:$0xff]  }
  0x4c   :  { %v4010_v6 = vld [vmem:[%s4835_s0 + $0x4] ss:$16 sps:$4 sm:$0xff]   ;;  %v4000_v8 = vld [vmem:[#allocation2 + $0x1c0] ss:$16 sps:$4 sm:$0xff]   ;;  %v4001_v9 = vld [vmem:[#allocation2 + $0x1c8] ss:$16 sps:$4 sm:$0xff]  }
  0x4d   :  { %1742 = vmatpush1.bf16.msra.mxu0 %v3946_v22  ;;  %1906 = vmatpush1.bf16.msra.mxu1 %v3947_v23  ;;  %v118_v63 = vcombine.high %v95_v58, %v109_v59  ;;  %v4013_v7 = vld [vmem:[%s4835_s0 + $0x24] ss:$16 sps:$4 sm:$0xff]   ;;  %v4004_v11 = vld [vmem:[#allocation2 + $0x1ec] ss:$16 sps:$4 sm:$0xff]   ;;  %v4744_v12 = vrot.slane %v4010_v6, %v4727_v53  ;;  %v4006_v14 = vld [vmem:[#allocation2 + $0x1e0] ss:$16 sps:$4 sm:$0xff]   ;;  %v117_v16 = vcombine.low %v95_v58, %v109_v59 }
  0x4e   :  { %1743 = vmatprep.subr.bf16.mxu0 %v3948_v24  ;;  %1907 = vmatprep.subr.bf16.mxu1 %v3950_v25  ;;  %v4002_v10 = vld [vmem:[#allocation2 + $0x1e4] ss:$16 sps:$4 sm:$0xff]   ;;  %v4747_v13 = vrot.slane %v4013_v7, %v4727_v53  ;;  %v4007_v15 = vld [vmem:[#allocation2 + $0x1e8] ss:$16 sps:$4 sm:$0xff]   ;;  %v4019_v18 = vld [vmem:[#allocation2 + $0x20c] ss:$16 sps:$4 sm:$0xff]  }
  0x4f   :  { %v166_v1 = vpack.c.bf16 %v118_v63, %v118_v63  ;;  %v4016_v17 = vld [vmem:[#allocation2 + $0x204] ss:$16 sps:$4 sm:$0xff]   ;;  %v4014_v20 = vld [vmem:[#allocation2 + $0x200] ss:$16 sps:$4 sm:$0xff]   ;;  %v4017_v21 = vld [vmem:[#allocation2 + $0x208] ss:$16 sps:$4 sm:$0xff]   ;;  %v165_v22 = vpack.c.bf16 %v117_v16, %v117_v16 }
  0x50   :  { %v120_v19 = vcombine.high %v4744_v12, %v4747_v13  ;;  %v4022_v23 = vld [vmem:[#allocation2 + $0x224] ss:$16 sps:$4 sm:$0xff]   ;;  %v4025_v24 = vld [vmem:[#allocation2 + $0x22c] ss:$16 sps:$4 sm:$0xff]   ;;  %v4038_v38 = vld [vmem:[#allocation2 + $0x280] ss:$16 sps:$4 sm:$0xff]  }
  0x51   :  { %1744 = vmatpush1.bf16.msra.mxu0 %v3952_v26  ;;  %1908 = vmatpush1.bf16.msra.mxu1 %v3953_v27  ;;  %v4020_v26 = vld [vmem:[#allocation2 + $0x220] ss:$16 sps:$4 sm:$0xff]   ;;  %v4023_v27 = vld [vmem:[#allocation2 + $0x228] ss:$16 sps:$4 sm:$0xff]   ;;  %v4046_v40 = vld [vmem:[#allocation2 + $0x2a4] ss:$16 sps:$4 sm:$0xff]  }
  0x52   :  { %1745 = vmatprep.subr.bf16.mxu0 %v3954_v28  ;;  %1909 = vmatprep.subr.bf16.mxu1 %v3956_v29  ;;  %v168_v25 = vpack.c.bf16 %v120_v19, %v120_v19  ;;  %v4028_v28 = vld [vmem:[#allocation2 + $0x244] ss:$16 sps:$4 sm:$0xff]   ;;  %v4031_v29 = vld [vmem:[#allocation2 + $0x24c] ss:$16 sps:$4 sm:$0xff]   ;;  %v4041_v39 = vld [vmem:[#allocation2 + $0x288] ss:$16 sps:$4 sm:$0xff]  }
  0x53   :  { %1763 = vmatprep.mubr.bf16.mxu0 %v166_v1  ;;  %1927 = vmatprep.mubr.bf16.mxu1 %v166_v1  ;;  %v4055_v45 = vld [vmem:[#allocation2 + $0x2cc] ss:$16 sps:$4 sm:$0xff]   ;;  %v4062_v56 = vld [vmem:[#allocation2 + $0x300] ss:$16 sps:$4 sm:$0xff]   ;;  %v4070_v58 = vld [vmem:[#allocation2 + $0x324] ss:$16 sps:$4 sm:$0xff]  }
  0x54   :  { %v4067_v55 = vld [vmem:[#allocation2 + $0x30c] ss:$16 sps:$4 sm:$0xff]   ;;  %v4077_v1 = vld [vmem:[#allocation2 + $0x348] ss:$16 sps:$4 sm:$0xff]   ;;  %v4088_v6 = vld [vmem:[#allocation2 + $0x384] ss:$16 sps:$4 sm:$0xff]  }
  0x55   :  { %1746 = vmatpush1.bf16.msra.mxu0 %v3958_v30  ;;  %1910 = vmatpush1.bf16.msra.mxu1 %v3959_v31  ;;  %v4026_v30 = vld [vmem:[#allocation2 + $0x240] ss:$16 sps:$4 sm:$0xff]   ;;  %v4029_v31 = vld [vmem:[#allocation2 + $0x248] ss:$16 sps:$4 sm:$0xff]   ;;  %v4073_v59 = vld [vmem:[#allocation2 + $0x32c] ss:$16 sps:$4 sm:$0xff]  }
  0x56   :  { %1747 = vmatprep.subr.bf16.mxu0 %v3960_v32  ;;  %1911 = vmatprep.subr.bf16.mxu1 %v3962_v33  ;;  %v4034_v32 = vld [vmem:[#allocation2 + $0x264] ss:$16 sps:$4 sm:$0xff]   ;;  %v4037_v33 = vld [vmem:[#allocation2 + $0x26c] ss:$16 sps:$4 sm:$0xff]   ;;  %v4101_v19 = vld [vmem:[#allocation2 + $0x3c8] ss:$16 sps:$4 sm:$0xff]  }
  0x57   :  { %v4079_v63 = vld [vmem:[#allocation2 + $0x34c] ss:$16 sps:$4 sm:$0xff]   ;;  %v4100_v16 = vld [vmem:[#allocation2 + $0x3c4] ss:$16 sps:$4 sm:$0xff]  }
  0x58   :  { %v4091_v7 = vld [vmem:[#allocation2 + $0x38c] ss:$16 sps:$4 sm:$0xff]  }
  0x59   :  { %1748 = vmatpush1.bf16.msra.mxu0 %v3964_v34  ;;  %1912 = vmatpush1.bf16.msra.mxu1 %v3965_v35  ;;  %v4032_v34 = vld [vmem:[#allocation2 + $0x260] ss:$16 sps:$4 sm:$0xff]   ;;  %v4035_v35 = vld [vmem:[#allocation2 + $0x268] ss:$16 sps:$4 sm:$0xff]  }
  0x5a   :  { %1749 = vmatprep.subr.bf16.mxu0 %v3966_v36  ;;  %1913 = vmatprep.subr.bf16.mxu1 %v3968_v37  ;;  %v4040_v36 = vld [vmem:[#allocation2 + $0x284] ss:$16 sps:$4 sm:$0xff]   ;;  %v4043_v37 = vld [vmem:[#allocation2 + $0x28c] ss:$16 sps:$4 sm:$0xff]  }
  0x5d   :  { %1750 = vmatpush1.bf16.msra.mxu0 %v3970_v41  ;;  %1914 = vmatpush1.bf16.msra.mxu1 %v3971_v42  ;;  %v4049_v41 = vld [vmem:[#allocation2 + $0x2ac] ss:$16 sps:$4 sm:$0xff]   ;;  %v4044_v42 = vld [vmem:[#allocation2 + $0x2a0] ss:$16 sps:$4 sm:$0xff]  }
  0x5e   :  { %1751 = vmatprep.subr.bf16.mxu0 %v3972_v43  ;;  %1915 = vmatprep.subr.bf16.mxu1 %v3974_v44  ;;  %v4047_v43 = vld [vmem:[#allocation2 + $0x2a8] ss:$16 sps:$4 sm:$0xff]   ;;  %v4052_v44 = vld [vmem:[#allocation2 + $0x2c4] ss:$16 sps:$4 sm:$0xff]  }
  0x61   :  { %1752 = vmatpush1.bf16.msra.mxu0 %v3976_v47  ;;  %1916 = vmatpush1.bf16.msra.mxu1 %v3977_v48  ;;  %v4050_v47 = vld [vmem:[#allocation2 + $0x2c0] ss:$16 sps:$4 sm:$0xff]   ;;  %v4053_v48 = vld [vmem:[#allocation2 + $0x2c8] ss:$16 sps:$4 sm:$0xff]  }
  0x62   :  { %1753 = vmatprep.subr.bf16.mxu0 %v3978_v49  ;;  %1917 = vmatprep.subr.bf16.mxu1 %v3980_v50  ;;  %v4058_v49 = vld [vmem:[#allocation2 + $0x2e4] ss:$16 sps:$4 sm:$0xff]   ;;  %v4061_v50 = vld [vmem:[#allocation2 + $0x2ec] ss:$16 sps:$4 sm:$0xff]  }
  0x65   :  { %1754 = vmatpush1.bf16.msra.mxu0 %v3982_v51  ;;  %1918 = vmatpush1.bf16.msra.mxu1 %v3983_v52  ;;  %v4056_v51 = vld [vmem:[#allocation2 + $0x2e0] ss:$16 sps:$4 sm:$0xff]   ;;  %v4059_v52 = vld [vmem:[#allocation2 + $0x2e8] ss:$16 sps:$4 sm:$0xff]  }
  0x66   :  { %1755 = vmatprep.subr.bf16.mxu0 %v3984_v54  ;;  %1919 = vmatprep.subr.bf16.mxu1 %v3986_v57  ;;  %v4064_v54 = vld [vmem:[#allocation2 + $0x304] ss:$16 sps:$4 sm:$0xff]   ;;  %v4065_v57 = vld [vmem:[#allocation2 + $0x308] ss:$16 sps:$4 sm:$0xff]  }
  0x69   :  { %1756 = vmatpush1.bf16.msra.mxu0 %v3988_v60  ;;  %1920 = vmatpush1.bf16.msra.mxu1 %v3989_v61  ;;  %v4068_v60 = vld [vmem:[#allocation2 + $0x320] ss:$16 sps:$4 sm:$0xff]   ;;  %v4071_v61 = vld [vmem:[#allocation2 + $0x328] ss:$16 sps:$4 sm:$0xff]  }
  0x6a   :  { %1757 = vmatprep.subr.bf16.mxu0 %v3990_v62  ;;  %1921 = vmatprep.subr.bf16.mxu1 %v3992_v0  ;;  %v4076_v62 = vld [vmem:[#allocation2 + $0x344] ss:$16 sps:$4 sm:$0xff]   ;;  %v4074_v0 = vld [vmem:[#allocation2 + $0x340] ss:$16 sps:$4 sm:$0xff]  }
  0x6d   :  { %1758 = vmatpush1.bf16.msra.mxu0 %v3994_v2  ;;  %1922 = vmatpush1.bf16.msra.mxu1 %v3995_v3  ;;  %v4082_v2 = vld [vmem:[#allocation2 + $0x364] ss:$16 sps:$4 sm:$0xff]   ;;  %v4085_v3 = vld [vmem:[#allocation2 + $0x36c] ss:$16 sps:$4 sm:$0xff]  }
  0x6e   :  { %1759 = vmatprep.subr.bf16.mxu0 %v3996_v4  ;;  %1923 = vmatprep.subr.bf16.mxu1 %v3998_v5  ;;  %v4080_v4 = vld [vmem:[#allocation2 + $0x360] ss:$16 sps:$4 sm:$0xff]   ;;  %v4083_v5 = vld [vmem:[#allocation2 + $0x368] ss:$16 sps:$4 sm:$0xff]  }
  0x71   :  { %1760 = vmatpush1.bf16.msra.mxu0 %v4000_v8  ;;  %1924 = vmatpush1.bf16.msra.mxu1 %v4001_v9  ;;  %v4086_v8 = vld [vmem:[#allocation2 + $0x380] ss:$16 sps:$4 sm:$0xff]   ;;  %v4089_v9 = vld [vmem:[#allocation2 + $0x388] ss:$16 sps:$4 sm:$0xff]  }
  0x72   :  { %1761 = vmatprep.subr.bf16.mxu0 %v4002_v10  ;;  %1925 = vmatprep.subr.bf16.mxu1 %v4004_v11  ;;  %v4094_v10 = vld [vmem:[#allocation2 + $0x3a4] ss:$16 sps:$4 sm:$0xff]   ;;  %v4097_v11 = vld [vmem:[#allocation2 + $0x3ac] ss:$16 sps:$4 sm:$0xff]  }
  0x75   :  { %1762 = vmatpush1.bf16.msra.mxu0 %v4006_v14  ;;  %1926 = vmatpush1.bf16.msra.mxu1 %v4007_v15  ;;  %v4092_v14 = vld [vmem:[#allocation2 + $0x3a0] ss:$16 sps:$4 sm:$0xff]   ;;  %v4095_v15 = vld [vmem:[#allocation2 + $0x3a8] ss:$16 sps:$4 sm:$0xff]  }
  0x76   :  { %1772 = vmatprep.subr.bf16.mxu0 %v4016_v17  ;;  %1936 = vmatprep.subr.bf16.mxu1 %v4019_v18  ;;  %v4103_v17 = vld [vmem:[#allocation2 + $0x3cc] ss:$16 sps:$4 sm:$0xff]   ;;  %v4098_v18 = vld [vmem:[#allocation2 + $0x3c0] ss:$16 sps:$4 sm:$0xff]  }
  0x78   :  { %1764 = vmatmul.mubr.bf16.vlgmr.msra.gmra.mrb[0].mxu0 %v165_v22  ;;  %1928 = vmatmul.mubr.bf16.vlgmr.msra.gmra.mrb[0].mxu1 %v165_v22  ;;  %v4104_v22 = vld [vmem:[#allocation2 + $0x3e0] ss:$16 sps:$4 sm:$0xff]  }
  0x79   :  { %1773 = vmatpush1.bf16.msra.mxu0 %v4014_v20  ;;  %1937 = vmatpush1.bf16.msra.mxu1 %v4017_v21  ;;  %v4106_v20 = vld [vmem:[#allocation2 + $0x3e4] ss:$16 sps:$4 sm:$0xff]   ;;  %v4109_v21 = vld [vmem:[#allocation2 + $0x3ec] ss:$16 sps:$4 sm:$0xff]  }
  0x7a   :  { %1774 = vmatprep.subr.bf16.mxu0 %v4022_v23  ;;  %1938 = vmatprep.subr.bf16.mxu1 %v4025_v24  ;;  %v4107_v23 = vld [vmem:[#allocation2 + $0x3e8] ss:$16 sps:$4 sm:$0xff]   ;;  %v119_v24 = vcombine.low %v4744_v12, %v4747_v13 }
  0x7b   :  { %1804 = vmatprep.mubr.bf16.mxu0 %v168_v25  ;;  %1968 = vmatprep.mubr.bf16.mxu1 %v168_v25  ;;  %v4112_v25 = vld [vmem:[#allocation2 + $0x404] ss:$16 sps:$4 sm:$0xff]   ;;  %v4206_v12 = vld [vmem:[%s4835_s0 + $0x8] ss:$16 sps:$4 sm:$0xff]  }
  0x7c   :  { %v4208_v13 = vld [vmem:[%s4835_s0 + $0x28] ss:$16 sps:$4 sm:$0xff]  }
  0x7d   :  { %1775 = vmatpush1.bf16.msra.mxu0 %v4020_v26  ;;  %1939 = vmatpush1.bf16.msra.mxu1 %v4023_v27  ;;  %v4115_v26 = vld [vmem:[#allocation2 + $0x40c] ss:$16 sps:$4 sm:$0xff]   ;;  %v4110_v27 = vld [vmem:[#allocation2 + $0x400] ss:$16 sps:$4 sm:$0xff]  }
  0x7e   :  { %1776 = vmatprep.subr.bf16.mxu0 %v4028_v28  ;;  %1940 = vmatprep.subr.bf16.mxu1 %v4031_v29  ;;  %v4113_v28 = vld [vmem:[#allocation2 + $0x408] ss:$16 sps:$4 sm:$0xff]   ;;  %v167_v29 = vpack.c.bf16 %v119_v24, %v119_v24  ;;  %v4188_v24 = vld [vmem:[#allocation2 + $0x5a0] ss:$16 sps:$4 sm:$0xff]  }
  0x81   :  { %1777 = vmatpush1.bf16.msra.mxu0 %v4026_v30  ;;  %1941 = vmatpush1.bf16.msra.mxu1 %v4029_v31  ;;  %v4118_v30 = vld [vmem:[#allocation2 + $0x424] ss:$16 sps:$4 sm:$0xff]   ;;  %v4121_v31 = vld [vmem:[#allocation2 + $0x42c] ss:$16 sps:$4 sm:$0xff]  }
  0x82   :  { %1778 = vmatprep.subr.bf16.mxu0 %v4034_v32  ;;  %1942 = vmatprep.subr.bf16.mxu1 %v4037_v33  ;;  %v4116_v32 = vld [vmem:[#allocation2 + $0x420] ss:$16 sps:$4 sm:$0xff]   ;;  %v4119_v33 = vld [vmem:[#allocation2 + $0x428] ss:$16 sps:$4 sm:$0xff]  }
  0x85   :  { %1779 = vmatpush1.bf16.msra.mxu0 %v4032_v34  ;;  %1943 = vmatpush1.bf16.msra.mxu1 %v4035_v35  ;;  %v4124_v34 = vld [vmem:[#allocation2 + $0x444] ss:$16 sps:$4 sm:$0xff]   ;;  %v4127_v35 = vld [vmem:[#allocation2 + $0x44c] ss:$16 sps:$4 sm:$0xff]  }
  0x86   :  { %1780 = vmatprep.subr.bf16.mxu0 %v4040_v36  ;;  %1944 = vmatprep.subr.bf16.mxu1 %v4043_v37  ;;  %v4760_v36 = vrot.slane %v4206_v12, %v4727_v53  ;;  %v4763_v37 = vrot.slane %v4208_v13, %v4727_v53 }
  0x89   :  { %1781 = vmatpush1.bf16.msra.mxu0 %v4038_v38  ;;  %1945 = vmatpush1.bf16.msra.mxu1 %v4041_v39  ;;  %v4122_v38 = vld [vmem:[#allocation2 + $0x440] ss:$16 sps:$4 sm:$0xff]   ;;  %v4125_v39 = vld [vmem:[#allocation2 + $0x448] ss:$16 sps:$4 sm:$0xff]  }
  0x8a   :  { %1782 = vmatprep.subr.bf16.mxu0 %v4046_v40  ;;  %1946 = vmatprep.subr.bf16.mxu1 %v4049_v41  ;;  %v154_v40 = vcombine.high %v4760_v36, %v4763_v37  ;;  %v4130_v41 = vld [vmem:[#allocation2 + $0x464] ss:$16 sps:$4 sm:$0xff]  }
  0x8d   :  { %1783 = vmatpush1.bf16.msra.mxu0 %v4044_v42  ;;  %1947 = vmatpush1.bf16.msra.mxu1 %v4047_v43  ;;  %v4133_v42 = vld [vmem:[#allocation2 + $0x46c] ss:$16 sps:$4 sm:$0xff]   ;;  %v170_v43 = vpack.c.bf16 %v154_v40, %v154_v40 }
  0x8e   :  { %1784 = vmatprep.subr.bf16.mxu0 %v4052_v44  ;;  %1948 = vmatprep.subr.bf16.mxu1 %v4055_v45  ;;  %v4128_v44 = vld [vmem:[#allocation2 + $0x460] ss:$16 sps:$4 sm:$0xff]   ;;  %v4131_v45 = vld [vmem:[#allocation2 + $0x468] ss:$16 sps:$4 sm:$0xff]   ;;  %v4215_v40 = vld [vmem:[#allocation2 + $0x60c] ss:$16 sps:$4 sm:$0xff]  }
  0x91   :  { %1785 = vmatpush1.bf16.msra.mxu0 %v4050_v47  ;;  %1949 = vmatpush1.bf16.msra.mxu1 %v4053_v48  ;;  %v4136_v47 = vld [vmem:[#allocation2 + $0x484] ss:$16 sps:$4 sm:$0xff]   ;;  %v4139_v48 = vld [vmem:[#allocation2 + $0x48c] ss:$16 sps:$4 sm:$0xff]  }
  0x92   :  { %1786 = vmatprep.subr.bf16.mxu0 %v4058_v49  ;;  %1950 = vmatprep.subr.bf16.mxu1 %v4061_v50  ;;  %v4134_v49 = vld [vmem:[#allocation2 + $0x480] ss:$16 sps:$4 sm:$0xff]   ;;  %v4137_v50 = vld [vmem:[#allocation2 + $0x488] ss:$16 sps:$4 sm:$0xff]  }
  0x95   :  { %1787 = vmatpush1.bf16.msra.mxu0 %v4056_v51  ;;  %1951 = vmatpush1.bf16.msra.mxu1 %v4059_v52  ;;  %v4142_v51 = vld [vmem:[#allocation2 + $0x4a4] ss:$16 sps:$4 sm:$0xff]   ;;  %v4145_v52 = vld [vmem:[#allocation2 + $0x4ac] ss:$16 sps:$4 sm:$0xff]  }
  0x96   :  { %1788 = vmatprep.subr.bf16.mxu0 %v4064_v54  ;;  %1952 = vmatprep.subr.bf16.mxu1 %v4067_v55  ;;  %v4140_v54 = vld [vmem:[#allocation2 + $0x4a0] ss:$16 sps:$4 sm:$0xff]   ;;  %v4143_v55 = vld [vmem:[#allocation2 + $0x4a8] ss:$16 sps:$4 sm:$0xff]  }
  0x99   :  { %1789 = vmatpush1.bf16.msra.mxu0 %v4062_v56  ;;  %1953 = vmatpush1.bf16.msra.mxu1 %v4065_v57  ;;  %v4148_v56 = vld [vmem:[#allocation2 + $0x4c4] ss:$16 sps:$4 sm:$0xff]   ;;  %v4151_v57 = vld [vmem:[#allocation2 + $0x4cc] ss:$16 sps:$4 sm:$0xff]  }
  0x9a   :  { %1790 = vmatprep.subr.bf16.mxu0 %v4070_v58  ;;  %1954 = vmatprep.subr.bf16.mxu1 %v4073_v59  ;;  %v4146_v58 = vld [vmem:[#allocation2 + $0x4c0] ss:$16 sps:$4 sm:$0xff]   ;;  %v4149_v59 = vld [vmem:[#allocation2 + $0x4c8] ss:$16 sps:$4 sm:$0xff]  }
  0x9d   :  { %1791 = vmatpush1.bf16.msra.mxu0 %v4068_v60  ;;  %1955 = vmatpush1.bf16.msra.mxu1 %v4071_v61  ;;  %v4154_v60 = vld [vmem:[#allocation2 + $0x4e4] ss:$16 sps:$4 sm:$0xff]   ;;  %v4157_v61 = vld [vmem:[#allocation2 + $0x4ec] ss:$16 sps:$4 sm:$0xff]  }
  0x9e   :  { %1792 = vmatprep.subr.bf16.mxu0 %v4076_v62  ;;  %1956 = vmatprep.subr.bf16.mxu1 %v4079_v63  ;;  %v4152_v62 = vld [vmem:[#allocation2 + $0x4e0] ss:$16 sps:$4 sm:$0xff]   ;;  %v4155_v63 = vld [vmem:[#allocation2 + $0x4e8] ss:$16 sps:$4 sm:$0xff]  }
  0xa1   :  { %1793 = vmatpush1.bf16.msra.mxu0 %v4074_v0  ;;  %1957 = vmatpush1.bf16.msra.mxu1 %v4077_v1  ;;  %v4160_v0 = vld [vmem:[#allocation2 + $0x504] ss:$16 sps:$4 sm:$0xff]   ;;  %v4163_v1 = vld [vmem:[#allocation2 + $0x50c] ss:$16 sps:$4 sm:$0xff]  }
  0xa2   :  { %1794 = vmatprep.subr.bf16.mxu0 %v4082_v2  ;;  %1958 = vmatprep.subr.bf16.mxu1 %v4085_v3  ;;  %v4158_v2 = vld [vmem:[#allocation2 + $0x500] ss:$16 sps:$4 sm:$0xff]   ;;  %v4161_v3 = vld [vmem:[#allocation2 + $0x508] ss:$16 sps:$4 sm:$0xff]  }
  0xa5   :  { %1795 = vmatpush1.bf16.msra.mxu0 %v4080_v4  ;;  %1959 = vmatpush1.bf16.msra.mxu1 %v4083_v5  ;;  %v4166_v4 = vld [vmem:[#allocation2 + $0x524] ss:$16 sps:$4 sm:$0xff]   ;;  %v4169_v5 = vld [vmem:[#allocation2 + $0x52c] ss:$16 sps:$4 sm:$0xff]  }
  0xa6   :  { %1796 = vmatprep.subr.bf16.mxu0 %v4088_v6  ;;  %1960 = vmatprep.subr.bf16.mxu1 %v4091_v7  ;;  %v4164_v6 = vld [vmem:[#allocation2 + $0x520] ss:$16 sps:$4 sm:$0xff]   ;;  %v4167_v7 = vld [vmem:[#allocation2 + $0x528] ss:$16 sps:$4 sm:$0xff]  }
  0xa9   :  { %1797 = vmatpush1.bf16.msra.mxu0 %v4086_v8  ;;  %1961 = vmatpush1.bf16.msra.mxu1 %v4089_v9  ;;  %v4172_v8 = vld [vmem:[#allocation2 + $0x544] ss:$16 sps:$4 sm:$0xff]   ;;  %v4175_v9 = vld [vmem:[#allocation2 + $0x54c] ss:$16 sps:$4 sm:$0xff]  }
  0xaa   :  { %1798 = vmatprep.subr.bf16.mxu0 %v4094_v10  ;;  %1962 = vmatprep.subr.bf16.mxu1 %v4097_v11  ;;  %v4170_v10 = vld [vmem:[#allocation2 + $0x540] ss:$16 sps:$4 sm:$0xff]   ;;  %v4173_v11 = vld [vmem:[#allocation2 + $0x548] ss:$16 sps:$4 sm:$0xff]  }
  0xad   :  { %1799 = vmatpush1.bf16.msra.mxu0 %v4092_v14  ;;  %1963 = vmatpush1.bf16.msra.mxu1 %v4095_v15  ;;  %v4178_v14 = vld [vmem:[#allocation2 + $0x564] ss:$16 sps:$4 sm:$0xff]   ;;  %v4181_v15 = vld [vmem:[#allocation2 + $0x56c] ss:$16 sps:$4 sm:$0xff]  }
  0xae   :  { %1800 = vmatprep.subr.bf16.mxu0 %v4100_v16  ;;  %1964 = vmatprep.subr.bf16.mxu1 %v4103_v17  ;;  %v4176_v16 = vld [vmem:[#allocation2 + $0x560] ss:$16 sps:$4 sm:$0xff]   ;;  %v4179_v17 = vld [vmem:[#allocation2 + $0x568] ss:$16 sps:$4 sm:$0xff]  }
  0xb1   :  { %1801 = vmatpush1.bf16.msra.mxu0 %v4098_v18  ;;  %1965 = vmatpush1.bf16.msra.mxu1 %v4101_v19  ;;  %v4184_v18 = vld [vmem:[#allocation2 + $0x584] ss:$16 sps:$4 sm:$0xff]   ;;  %v4187_v19 = vld [vmem:[#allocation2 + $0x58c] ss:$16 sps:$4 sm:$0xff]  }
  0xb2   :  { %1802 = vmatprep.subr.bf16.mxu0 %v4106_v20  ;;  %1966 = vmatprep.subr.bf16.mxu1 %v4109_v21  ;;  %v4182_v20 = vld [vmem:[#allocation2 + $0x580] ss:$16 sps:$4 sm:$0xff]   ;;  %v4185_v21 = vld [vmem:[#allocation2 + $0x588] ss:$16 sps:$4 sm:$0xff]  }
  0xb5   :  { %1803 = vmatpush1.bf16.msra.mxu0 %v4104_v22  ;;  %1967 = vmatpush1.bf16.msra.mxu1 %v4107_v23  ;;  %v4190_v22 = vld [vmem:[#allocation2 + $0x5a4] ss:$16 sps:$4 sm:$0xff]   ;;  %v4193_v23 = vld [vmem:[#allocation2 + $0x5ac] ss:$16 sps:$4 sm:$0xff]  }
  0xb6   :  { %1813 = vmatprep.subr.bf16.mxu0 %v4112_v25  ;;  %1977 = vmatprep.subr.bf16.mxu1 %v4115_v26  ;;  %v4191_v25 = vld [vmem:[#allocation2 + $0x5a8] ss:$16 sps:$4 sm:$0xff]   ;;  %v4196_v26 = vld [vmem:[#allocation2 + $0x5c4] ss:$16 sps:$4 sm:$0xff]  }
  0xb8   :  { %1805 = vmatmul.mubr.bf16.vlgmr.msra.gmra.mrb[0].mxu0 %v167_v29  ;;  %1969 = vmatmul.mubr.bf16.vlgmr.msra.gmra.mrb[0].mxu1 %v167_v29  ;;  %v4307_v29 = vld [vmem:[%s4835_s0 + $0x2c] ss:$16 sps:$4 sm:$0xff]  }
  0xb9   :  { %1814 = vmatpush1.bf16.msra.mxu0 %v4110_v27  ;;  %1978 = vmatpush1.bf16.msra.mxu1 %v4113_v28  ;;  %v4199_v27 = vld [vmem:[#allocation2 + $0x5cc] ss:$16 sps:$4 sm:$0xff]   ;;  %v4777_v13 = vrot.slane %v4307_v29, %v4727_v53  ;;  %v4282_v29 = vld [vmem:[#allocation2 + $0x780] ss:$16 sps:$4 sm:$0xff]  }
  0xba   :  { %1815 = vmatprep.subr.bf16.mxu0 %v4118_v30  ;;  %1979 = vmatprep.subr.bf16.mxu1 %v4121_v31  ;;  %v4306_v28 = vld [vmem:[%s4835_s0 + $0xc] ss:$16 sps:$4 sm:$0xff]   ;;  %v4194_v30 = vld [vmem:[#allocation2 + $0x5c0] ss:$16 sps:$4 sm:$0xff]   ;;  %v4197_v31 = vld [vmem:[#allocation2 + $0x5c8] ss:$16 sps:$4 sm:$0xff]  }
  0xbb   :  { %1845 = vmatprep.mubr.bf16.mxu0 %v170_v43  ;;  %2009 = vmatprep.mubr.bf16.mxu1 %v170_v43  ;;  %v4774_v12 = vrot.slane %v4306_v28, %v4727_v53  ;;  %v4213_v43 = vld [vmem:[#allocation2 + $0x608] ss:$16 sps:$4 sm:$0xff]   ;;  %v4218_v53 = vld [vmem:[#allocation2 + $0x624] ss:$16 sps:$4 sm:$0xff]   ;;  %v4287_v28 = vld [vmem:[#allocation2 + $0x78c] ss:$16 sps:$4 sm:$0xff]  }
  0xbd   :  { %1816 = vmatpush1.bf16.msra.mxu0 %v4116_v32  ;;  %1980 = vmatpush1.bf16.msra.mxu1 %v4119_v33  ;;  %v4202_v32 = vld [vmem:[#allocation2 + $0x5e4] ss:$16 sps:$4 sm:$0xff]   ;;  %v4205_v33 = vld [vmem:[#allocation2 + $0x5ec] ss:$16 sps:$4 sm:$0xff]  }
  0xbe   :  { %1817 = vmatprep.subr.bf16.mxu0 %v4124_v34  ;;  %1981 = vmatprep.subr.bf16.mxu1 %v4127_v35  ;;  %v4200_v34 = vld [vmem:[#allocation2 + $0x5e0] ss:$16 sps:$4 sm:$0xff]   ;;  %v4203_v35 = vld [vmem:[#allocation2 + $0x5e8] ss:$16 sps:$4 sm:$0xff]  }
  0xc1   :  { %1818 = vmatpush1.bf16.msra.mxu0 %v4122_v38  ;;  %1982 = vmatpush1.bf16.msra.mxu1 %v4125_v39  ;;  %v153_v38 = vcombine.low %v4760_v36, %v4763_v37  ;;  %v4212_v39 = vld [vmem:[#allocation2 + $0x604] ss:$16 sps:$4 sm:$0xff]   ;;  %v4216_v36 = vld [vmem:[#allocation2 + $0x620] ss:$16 sps:$4 sm:$0xff]   ;;  %v4219_v37 = vld [vmem:[#allocation2 + $0x628] ss:$16 sps:$4 sm:$0xff]  }
  0xc2   :  { %1819 = vmatprep.subr.bf16.mxu0 %v4130_v41  ;;  %1983 = vmatprep.subr.bf16.mxu1 %v4133_v42  ;;  %v156_v41 = vcombine.high %v4774_v12, %v4777_v13  ;;  %v4210_v42 = vld [vmem:[#allocation2 + $0x600] ss:$16 sps:$4 sm:$0xff]  }
  0xc5   :  { %1820 = vmatpush1.bf16.msra.mxu0 %v4128_v44  ;;  %1984 = vmatpush1.bf16.msra.mxu1 %v4131_v45  ;;  %v169_v44 = vpack.c.bf16 %v153_v38, %v153_v38  ;;  %v4221_v45 = vld [vmem:[#allocation2 + $0x62c] ss:$16 sps:$4 sm:$0xff]  }
  0xc6   :  { %1821 = vmatprep.subr.bf16.mxu0 %v4136_v47  ;;  %1985 = vmatprep.subr.bf16.mxu1 %v4139_v48  ;;  %v172_v47 = vpack.c.bf16 %v156_v41, %v156_v41  ;;  %v4224_v48 = vld [vmem:[#allocation2 + $0x644] ss:$16 sps:$4 sm:$0xff]   ;;  %v4299_v38 = vld [vmem:[#allocation2 + $0x7cc] ss:$16 sps:$4 sm:$0xff]  }
  0xc7   :  { %v4302_v41 = vld [vmem:[#allocation2 + $0x7e4] ss:$16 sps:$4 sm:$0xff]  }
  0xc9   :  { %1822 = vmatpush1.bf16.msra.mxu0 %v4134_v49  ;;  %1986 = vmatpush1.bf16.msra.mxu1 %v4137_v50  ;;  %v4227_v49 = vld [vmem:[#allocation2 + $0x64c] ss:$16 sps:$4 sm:$0xff]   ;;  %v4222_v50 = vld [vmem:[#allocation2 + $0x640] ss:$16 sps:$4 sm:$0xff]  }
  0xca   :  { %1823 = vmatprep.subr.bf16.mxu0 %v4142_v51  ;;  %1987 = vmatprep.subr.bf16.mxu1 %v4145_v52  ;;  %v4225_v51 = vld [vmem:[#allocation2 + $0x648] ss:$16 sps:$4 sm:$0xff]   ;;  %v4230_v52 = vld [vmem:[#allocation2 + $0x664] ss:$16 sps:$4 sm:$0xff]  }
  0xcd   :  { %1824 = vmatpush1.bf16.msra.mxu0 %v4140_v54  ;;  %1988 = vmatpush1.bf16.msra.mxu1 %v4143_v55  ;;  %v4233_v54 = vld [vmem:[#allocation2 + $0x66c] ss:$16 sps:$4 sm:$0xff]   ;;  %v4228_v55 = vld [vmem:[#allocation2 + $0x660] ss:$16 sps:$4 sm:$0xff]  }
  0xce   :  { %1825 = vmatprep.subr.bf16.mxu0 %v4148_v56  ;;  %1989 = vmatprep.subr.bf16.mxu1 %v4151_v57  ;;  %v4231_v56 = vld [vmem:[#allocation2 + $0x668] ss:$16 sps:$4 sm:$0xff]   ;;  %v4236_v57 = vld [vmem:[#allocation2 + $0x684] ss:$16 sps:$4 sm:$0xff]  }
  0xd1   :  { %1826 = vmatpush1.bf16.msra.mxu0 %v4146_v58  ;;  %1990 = vmatpush1.bf16.msra.mxu1 %v4149_v59  ;;  %v4239_v58 = vld [vmem:[#allocation2 + $0x68c] ss:$16 sps:$4 sm:$0xff]   ;;  %v4234_v59 = vld [vmem:[#allocation2 + $0x680] ss:$16 sps:$4 sm:$0xff]  }
  0xd2   :  { %1827 = vmatprep.subr.bf16.mxu0 %v4154_v60  ;;  %1991 = vmatprep.subr.bf16.mxu1 %v4157_v61  ;;  %v4237_v60 = vld [vmem:[#allocation2 + $0x688] ss:$16 sps:$4 sm:$0xff]   ;;  %v4242_v61 = vld [vmem:[#allocation2 + $0x6a4] ss:$16 sps:$4 sm:$0xff]  }
  0xd5   :  { %1828 = vmatpush1.bf16.msra.mxu0 %v4152_v62  ;;  %1992 = vmatpush1.bf16.msra.mxu1 %v4155_v63  ;;  %v4245_v62 = vld [vmem:[#allocation2 + $0x6ac] ss:$16 sps:$4 sm:$0xff]   ;;  %v4240_v63 = vld [vmem:[#allocation2 + $0x6a0] ss:$16 sps:$4 sm:$0xff]  }
  0xd6   :  { %1829 = vmatprep.subr.bf16.mxu0 %v4160_v0  ;;  %1993 = vmatprep.subr.bf16.mxu1 %v4163_v1  ;;  %v4243_v0 = vld [vmem:[#allocation2 + $0x6a8] ss:$16 sps:$4 sm:$0xff]   ;;  %v4248_v1 = vld [vmem:[#allocation2 + $0x6c4] ss:$16 sps:$4 sm:$0xff]  }
  0xd9   :  { %1830 = vmatpush1.bf16.msra.mxu0 %v4158_v2  ;;  %1994 = vmatpush1.bf16.msra.mxu1 %v4161_v3  ;;  %v4251_v2 = vld [vmem:[#allocation2 + $0x6cc] ss:$16 sps:$4 sm:$0xff]   ;;  %v4246_v3 = vld [vmem:[#allocation2 + $0x6c0] ss:$16 sps:$4 sm:$0xff]  }
  0xda   :  { %1831 = vmatprep.subr.bf16.mxu0 %v4166_v4  ;;  %1995 = vmatprep.subr.bf16.mxu1 %v4169_v5  ;;  %v4249_v4 = vld [vmem:[#allocation2 + $0x6c8] ss:$16 sps:$4 sm:$0xff]   ;;  %v4254_v5 = vld [vmem:[#allocation2 + $0x6e4] ss:$16 sps:$4 sm:$0xff]  }
  0xdd   :  { %1832 = vmatpush1.bf16.msra.mxu0 %v4164_v6  ;;  %1996 = vmatpush1.bf16.msra.mxu1 %v4167_v7  ;;  %v4257_v6 = vld [vmem:[#allocation2 + $0x6ec] ss:$16 sps:$4 sm:$0xff]   ;;  %v4252_v7 = vld [vmem:[#allocation2 + $0x6e0] ss:$16 sps:$4 sm:$0xff]  }
  0xde   :  { %1833 = vmatprep.subr.bf16.mxu0 %v4172_v8  ;;  %1997 = vmatprep.subr.bf16.mxu1 %v4175_v9  ;;  %v4255_v8 = vld [vmem:[#allocation2 + $0x6e8] ss:$16 sps:$4 sm:$0xff]   ;;  %v4260_v9 = vld [vmem:[#allocation2 + $0x704] ss:$16 sps:$4 sm:$0xff]  }
  0xe1   :  { %1834 = vmatpush1.bf16.msra.mxu0 %v4170_v10  ;;  %1998 = vmatpush1.bf16.msra.mxu1 %v4173_v11  ;;  %v4263_v10 = vld [vmem:[#allocation2 + $0x70c] ss:$16 sps:$4 sm:$0xff]   ;;  %v4258_v11 = vld [vmem:[#allocation2 + $0x700] ss:$16 sps:$4 sm:$0xff]  }
  0xe2   :  { %1835 = vmatprep.subr.bf16.mxu0 %v4178_v14  ;;  %1999 = vmatprep.subr.bf16.mxu1 %v4181_v15  ;;  %v4261_v14 = vld [vmem:[#allocation2 + $0x708] ss:$16 sps:$4 sm:$0xff]   ;;  %v4266_v15 = vld [vmem:[#allocation2 + $0x724] ss:$16 sps:$4 sm:$0xff]  }
  0xe5   :  { %1836 = vmatpush1.bf16.msra.mxu0 %v4176_v16  ;;  %2000 = vmatpush1.bf16.msra.mxu1 %v4179_v17  ;;  %v4269_v16 = vld [vmem:[#allocation2 + $0x72c] ss:$16 sps:$4 sm:$0xff]   ;;  %v4264_v17 = vld [vmem:[#allocation2 + $0x720] ss:$16 sps:$4 sm:$0xff]  }
  0xe6   :  { %1837 = vmatprep.subr.bf16.mxu0 %v4184_v18  ;;  %2001 = vmatprep.subr.bf16.mxu1 %v4187_v19  ;;  %v4267_v18 = vld [vmem:[#allocation2 + $0x728] ss:$16 sps:$4 sm:$0xff]   ;;  %v4272_v19 = vld [vmem:[#allocation2 + $0x744] ss:$16 sps:$4 sm:$0xff]  }
  0xe9   :  { %1838 = vmatpush1.bf16.msra.mxu0 %v4182_v20  ;;  %2002 = vmatpush1.bf16.msra.mxu1 %v4185_v21  ;;  %v4275_v20 = vld [vmem:[#allocation2 + $0x74c] ss:$16 sps:$4 sm:$0xff]   ;;  %v4270_v21 = vld [vmem:[#allocation2 + $0x740] ss:$16 sps:$4 sm:$0xff]  }
  0xea   :  { %1839 = vmatprep.subr.bf16.mxu0 %v4190_v22  ;;  %2003 = vmatprep.subr.bf16.mxu1 %v4193_v23  ;;  %v4273_v22 = vld [vmem:[#allocation2 + $0x748] ss:$16 sps:$4 sm:$0xff]   ;;  %v4278_v23 = vld [vmem:[#allocation2 + $0x764] ss:$16 sps:$4 sm:$0xff]  }
  0xed   :  { %1840 = vmatpush1.bf16.msra.mxu0 %v4188_v24  ;;  %2004 = vmatpush1.bf16.msra.mxu1 %v4191_v25  ;;  %v4281_v24 = vld [vmem:[#allocation2 + $0x76c] ss:$16 sps:$4 sm:$0xff]   ;;  %v4276_v25 = vld [vmem:[#allocation2 + $0x760] ss:$16 sps:$4 sm:$0xff]  }
  0xee   :  { %1841 = vmatprep.subr.bf16.mxu0 %v4196_v26  ;;  %2005 = vmatprep.subr.bf16.mxu1 %v4199_v27  ;;  %v4279_v26 = vld [vmem:[#allocation2 + $0x768] ss:$16 sps:$4 sm:$0xff]   ;;  %v4284_v27 = vld [vmem:[#allocation2 + $0x784] ss:$16 sps:$4 sm:$0xff]  }
  0xf1   :  { %1842 = vmatpush1.bf16.msra.mxu0 %v4194_v30  ;;  %2006 = vmatpush1.bf16.msra.mxu1 %v4197_v31  ;;  %v4285_v30 = vld [vmem:[#allocation2 + $0x788] ss:$16 sps:$4 sm:$0xff]   ;;  %v4290_v31 = vld [vmem:[#allocation2 + $0x7a4] ss:$16 sps:$4 sm:$0xff]  }
  0xf2   :  { %1843 = vmatprep.subr.bf16.mxu0 %v4202_v32  ;;  %2007 = vmatprep.subr.bf16.mxu1 %v4205_v33  ;;  %v4293_v32 = vld [vmem:[#allocation2 + $0x7ac] ss:$16 sps:$4 sm:$0xff]   ;;  %v4288_v33 = vld [vmem:[#allocation2 + $0x7a0] ss:$16 sps:$4 sm:$0xff]  }
  0xf5   :  { %1844 = vmatpush1.bf16.msra.mxu0 %v4200_v34  ;;  %2008 = vmatpush1.bf16.msra.mxu1 %v4203_v35  ;;  %v4291_v34 = vld [vmem:[#allocation2 + $0x7a8] ss:$16 sps:$4 sm:$0xff]   ;;  %v4296_v35 = vld [vmem:[#allocation2 + $0x7c4] ss:$16 sps:$4 sm:$0xff]  }
  0xf6   :  { %1854 = vmatprep.subr.bf16.mxu0 %v4212_v39  ;;  %2018 = vmatprep.subr.bf16.mxu1 %v4215_v40  ;;  %v4294_v39 = vld [vmem:[#allocation2 + $0x7c0] ss:$16 sps:$4 sm:$0xff]   ;;  %v4297_v40 = vld [vmem:[#allocation2 + $0x7c8] ss:$16 sps:$4 sm:$0xff]  }
  0xf8   :  { %1846 = vmatmul.mubr.bf16.vlgmr.msra.gmra.mrb[0].mxu0 %v169_v44  ;;  %2010 = vmatmul.mubr.bf16.vlgmr.msra.gmra.mrb[0].mxu1 %v169_v44  ;;  %v4303_v44 = vld [vmem:[#allocation2 + $0x7e8] ss:$16 sps:$4 sm:$0xff]  }
  0xf9   :  { %1855 = vmatpush1.bf16.msra.mxu0 %v4210_v42  ;;  %2019 = vmatpush1.bf16.msra.mxu1 %v4213_v43  ;;  %v4305_v42 = vld [vmem:[#allocation2 + $0x7ec] ss:$16 sps:$4 sm:$0xff]   ;;  %v4300_v43 = vld [vmem:[#allocation2 + $0x7e0] ss:$16 sps:$4 sm:$0xff]  }
  0xfa   :  { %1856 = vmatprep.subr.bf16.mxu0 %v4218_v53  ;;  %2020 = vmatprep.subr.bf16.mxu1 %v4221_v45  ;;  %v155_v53 = vcombine.low %v4774_v12, %v4777_v13  ;;  %v4310_v45 = vld [vmem:[#allocation5 + $0x4] ss:$16 sps:$4 sm:$0xff]   ;;  %v4314_v12 = vld [vmem:[#allocation5 + $0x20] ss:$16 sps:$4 sm:$0xff]   ;;  %v4317_v13 = vld [vmem:[#allocation5 + $0x28] ss:$16 sps:$4 sm:$0xff]  }
  0xfb   :  { %1886 = vmatprep.mubr.bf16.mxu0 %v172_v47  ;;  %2050 = vmatprep.mubr.bf16.mxu1 %v172_v47  ;;  %v4313_v47 = vld [vmem:[#allocation5 + $0xc] ss:$16 sps:$4 sm:$0xff]  }
  0xfd   :  { %1857 = vmatpush1.bf16.msra.mxu0 %v4216_v36  ;;  %2021 = vmatpush1.bf16.msra.mxu1 %v4219_v37  ;;  %v4308_v36 = vld [vmem:[#allocation5] ss:$16 sps:$4 sm:$0xff]   ;;  %v4311_v37 = vld [vmem:[#allocation5 + $0x8] ss:$16 sps:$4 sm:$0xff]  }
  0xfe   :  { %1858 = vmatprep.subr.bf16.mxu0 %v4224_v48  ;;  %2022 = vmatprep.subr.bf16.mxu1 %v4227_v49  ;;  %v171_v48 = vpack.c.bf16 %v155_v53, %v155_v53  ;;  %v4316_v49 = vld [vmem:[#allocation5 + $0x24] ss:$16 sps:$4 sm:$0xff]   ;;  %v4403_v53 = vld [vmem:[#allocation5 + $0x1ec] ss:$16 sps:$4 sm:$0xff]  }
 0x101   :  { %1859 = vmatpush1.bf16.msra.mxu0 %v4222_v50  ;;  %2023 = vmatpush1.bf16.msra.mxu1 %v4225_v51  ;;  %v4319_v50 = vld [vmem:[#allocation5 + $0x2c] ss:$16 sps:$4 sm:$0xff]   ;;  %v4322_v51 = vld [vmem:[#allocation5 + $0x44] ss:$16 sps:$4 sm:$0xff]  }
 0x102   :  { %1860 = vmatprep.subr.bf16.mxu0 %v4230_v52  ;;  %2024 = vmatprep.subr.bf16.mxu1 %v4233_v54  ;;  %v4325_v52 = vld [vmem:[#allocation5 + $0x4c] ss:$16 sps:$4 sm:$0xff]   ;;  %v4320_v54 = vld [vmem:[#allocation5 + $0x40] ss:$16 sps:$4 sm:$0xff]  }
 0x105   :  { %1861 = vmatpush1.bf16.msra.mxu0 %v4228_v55  ;;  %2025 = vmatpush1.bf16.msra.mxu1 %v4231_v56  ;;  %v4323_v55 = vld [vmem:[#allocation5 + $0x48] ss:$16 sps:$4 sm:$0xff]   ;;  %v4328_v56 = vld [vmem:[#allocation5 + $0x64] ss:$16 sps:$4 sm:$0xff]  }
 0x106   :  { %1862 = vmatprep.subr.bf16.mxu0 %v4236_v57  ;;  %2026 = vmatprep.subr.bf16.mxu1 %v4239_v58  ;;  %v4331_v57 = vld [vmem:[#allocation5 + $0x6c] ss:$16 sps:$4 sm:$0xff]   ;;  %v4326_v58 = vld [vmem:[#allocation5 + $0x60] ss:$16 sps:$4 sm:$0xff]  }
 0x109   :  { %1863 = vmatpush1.bf16.msra.mxu0 %v4234_v59  ;;  %2027 = vmatpush1.bf16.msra.mxu1 %v4237_v60  ;;  %v4329_v59 = vld [vmem:[#allocation5 + $0x68] ss:$16 sps:$4 sm:$0xff]   ;;  %v4334_v60 = vld [vmem:[#allocation5 + $0x84] ss:$16 sps:$4 sm:$0xff]  }
 0x10a   :  { %1864 = vmatprep.subr.bf16.mxu0 %v4242_v61  ;;  %2028 = vmatprep.subr.bf16.mxu1 %v4245_v62  ;;  %v4337_v61 = vld [vmem:[#allocation5 + $0x8c] ss:$16 sps:$4 sm:$0xff]   ;;  %v4332_v62 = vld [vmem:[#allocation5 + $0x80] ss:$16 sps:$4 sm:$0xff]  }
 0x10d   :  { %1865 = vmatpush1.bf16.msra.mxu0 %v4240_v63  ;;  %2029 = vmatpush1.bf16.msra.mxu1 %v4243_v0  ;;  %v4335_v63 = vld [vmem:[#allocation5 + $0x88] ss:$16 sps:$4 sm:$0xff]   ;;  %v4340_v0 = vld [vmem:[#allocation5 + $0xa4] ss:$16 sps:$4 sm:$0xff]  }
 0x10e   :  { %1866 = vmatprep.subr.bf16.mxu0 %v4248_v1  ;;  %2030 = vmatprep.subr.bf16.mxu1 %v4251_v2  ;;  %v4343_v1 = vld [vmem:[#allocation5 + $0xac] ss:$16 sps:$4 sm:$0xff]   ;;  %v4338_v2 = vld [vmem:[#allocation5 + $0xa0] ss:$16 sps:$4 sm:$0xff]  }
 0x111   :  { %1867 = vmatpush1.bf16.msra.mxu0 %v4246_v3  ;;  %2031 = vmatpush1.bf16.msra.mxu1 %v4249_v4  ;;  %v4341_v3 = vld [vmem:[#allocation5 + $0xa8] ss:$16 sps:$4 sm:$0xff]   ;;  %v4346_v4 = vld [vmem:[#allocation5 + $0xc4] ss:$16 sps:$4 sm:$0xff]  }
 0x112   :  { %1868 = vmatprep.subr.bf16.mxu0 %v4254_v5  ;;  %2032 = vmatprep.subr.bf16.mxu1 %v4257_v6  ;;  %v4349_v5 = vld [vmem:[#allocation5 + $0xcc] ss:$16 sps:$4 sm:$0xff]   ;;  %v4344_v6 = vld [vmem:[#allocation5 + $0xc0] ss:$16 sps:$4 sm:$0xff]  }
 0x115   :  { %1869 = vmatpush1.bf16.msra.mxu0 %v4252_v7  ;;  %2033 = vmatpush1.bf16.msra.mxu1 %v4255_v8  ;;  %v4347_v7 = vld [vmem:[#allocation5 + $0xc8] ss:$16 sps:$4 sm:$0xff]   ;;  %v4352_v8 = vld [vmem:[#allocation5 + $0xe4] ss:$16 sps:$4 sm:$0xff]  }
 0x116   :  { %1870 = vmatprep.subr.bf16.mxu0 %v4260_v9  ;;  %2034 = vmatprep.subr.bf16.mxu1 %v4263_v10  ;;  %v4355_v9 = vld [vmem:[#allocation5 + $0xec] ss:$16 sps:$4 sm:$0xff]   ;;  %v4350_v10 = vld [vmem:[#allocation5 + $0xe0] ss:$16 sps:$4 sm:$0xff]  }
 0x119   :  { %1871 = vmatpush1.bf16.msra.mxu0 %v4258_v11  ;;  %2035 = vmatpush1.bf16.msra.mxu1 %v4261_v14  ;;  %v4353_v11 = vld [vmem:[#allocation5 + $0xe8] ss:$16 sps:$4 sm:$0xff]   ;;  %v4358_v14 = vld [vmem:[#allocation5 + $0x104] ss:$16 sps:$4 sm:$0xff]  }
 0x11a   :  { %1872 = vmatprep.subr.bf16.mxu0 %v4266_v15  ;;  %2036 = vmatprep.subr.bf16.mxu1 %v4269_v16  ;;  %v4361_v15 = vld [vmem:[#allocation5 + $0x10c] ss:$16 sps:$4 sm:$0xff]   ;;  %v4356_v16 = vld [vmem:[#allocation5 + $0x100] ss:$16 sps:$4 sm:$0xff]  }
 0x11d   :  { %1873 = vmatpush1.bf16.msra.mxu0 %v4264_v17  ;;  %2037 = vmatpush1.bf16.msra.mxu1 %v4267_v18  ;;  %v4359_v17 = vld [vmem:[#allocation5 + $0x108] ss:$16 sps:$4 sm:$0xff]   ;;  %v4364_v18 = vld [vmem:[#allocation5 + $0x124] ss:$16 sps:$4 sm:$0xff]  }
 0x11e   :  { %1874 = vmatprep.subr.bf16.mxu0 %v4272_v19  ;;  %2038 = vmatprep.subr.bf16.mxu1 %v4275_v20  ;;  %v4367_v19 = vld [vmem:[#allocation5 + $0x12c] ss:$16 sps:$4 sm:$0xff]   ;;  %v4362_v20 = vld [vmem:[#allocation5 + $0x120] ss:$16 sps:$4 sm:$0xff]  }
 0x121   :  { %1875 = vmatpush1.bf16.msra.mxu0 %v4270_v21  ;;  %2039 = vmatpush1.bf16.msra.mxu1 %v4273_v22  ;;  %v4365_v21 = vld [vmem:[#allocation5 + $0x128] ss:$16 sps:$4 sm:$0xff]   ;;  %v4370_v22 = vld [vmem:[#allocation5 + $0x144] ss:$16 sps:$4 sm:$0xff]  }
 0x122   :  { %1876 = vmatprep.subr.bf16.mxu0 %v4278_v23  ;;  %2040 = vmatprep.subr.bf16.mxu1 %v4281_v24  ;;  %v4373_v23 = vld [vmem:[#allocation5 + $0x14c] ss:$16 sps:$4 sm:$0xff]   ;;  %v4368_v24 = vld [vmem:[#allocation5 + $0x140] ss:$16 sps:$4 sm:$0xff]  }
 0x125   :  { %1877 = vmatpush1.bf16.msra.mxu0 %v4276_v25  ;;  %2041 = vmatpush1.bf16.msra.mxu1 %v4279_v26  ;;  %v4371_v25 = vld [vmem:[#allocation5 + $0x148] ss:$16 sps:$4 sm:$0xff]   ;;  %v4376_v26 = vld [vmem:[#allocation5 + $0x164] ss:$16 sps:$4 sm:$0xff]  }
 0x126   :  { %1878 = vmatprep.subr.bf16.mxu0 %v4284_v27  ;;  %2042 = vmatprep.subr.bf16.mxu1 %v4287_v28  ;;  %v4379_v27 = vld [vmem:[#allocation5 + $0x16c] ss:$16 sps:$4 sm:$0xff]   ;;  %v4374_v28 = vld [vmem:[#allocation5 + $0x160] ss:$16 sps:$4 sm:$0xff]  }
 0x129   :  { %1879 = vmatpush1.bf16.msra.mxu0 %v4282_v29  ;;  %2043 = vmatpush1.bf16.msra.mxu1 %v4285_v30  ;;  %v4377_v29 = vld [vmem:[#allocation5 + $0x168] ss:$16 sps:$4 sm:$0xff]   ;;  %v4382_v30 = vld [vmem:[#allocation5 + $0x184] ss:$16 sps:$4 sm:$0xff]  }
 0x12a   :  { %1880 = vmatprep.subr.bf16.mxu0 %v4290_v31  ;;  %2044 = vmatprep.subr.bf16.mxu1 %v4293_v32  ;;  %v4385_v31 = vld [vmem:[#allocation5 + $0x18c] ss:$16 sps:$4 sm:$0xff]   ;;  %v4380_v32 = vld [vmem:[#allocation5 + $0x180] ss:$16 sps:$4 sm:$0xff]  }
 0x12d   :  { %1881 = vmatpush1.bf16.msra.mxu0 %v4288_v33  ;;  %2045 = vmatpush1.bf16.msra.mxu1 %v4291_v34  ;;  %v4383_v33 = vld [vmem:[#allocation5 + $0x188] ss:$16 sps:$4 sm:$0xff]   ;;  %v4388_v34 = vld [vmem:[#allocation5 + $0x1a4] ss:$16 sps:$4 sm:$0xff]  }
 0x12e   :  { %1882 = vmatprep.subr.bf16.mxu0 %v4296_v35  ;;  %2046 = vmatprep.subr.bf16.mxu1 %v4299_v38  ;;  %v4391_v35 = vld [vmem:[#allocation5 + $0x1ac] ss:$16 sps:$4 sm:$0xff]   ;;  %v4386_v38 = vld [vmem:[#allocation5 + $0x1a0] ss:$16 sps:$4 sm:$0xff]  }
 0x131   :  { %1883 = vmatpush1.bf16.msra.mxu0 %v4294_v39  ;;  %2047 = vmatpush1.bf16.msra.mxu1 %v4297_v40  ;;  %v4389_v39 = vld [vmem:[#allocation5 + $0x1a8] ss:$16 sps:$4 sm:$0xff]   ;;  %v4394_v40 = vld [vmem:[#allocation5 + $0x1c4] ss:$16 sps:$4 sm:$0xff]  }
 0x132   :  { %1884 = vmatprep.subr.bf16.mxu0 %v4302_v41  ;;  %2048 = vmatprep.subr.bf16.mxu1 %v4305_v42  ;;  %v4397_v41 = vld [vmem:[#allocation5 + $0x1cc] ss:$16 sps:$4 sm:$0xff]   ;;  %v4392_v42 = vld [vmem:[#allocation5 + $0x1c0] ss:$16 sps:$4 sm:$0xff]  }
 0x135   :  { %1885 = vmatpush1.bf16.msra.mxu0 %v4300_v43  ;;  %2049 = vmatpush1.bf16.msra.mxu1 %v4303_v44  ;;  %v4395_v43 = vld [vmem:[#allocation5 + $0x1c8] ss:$16 sps:$4 sm:$0xff]   ;;  %v4400_v44 = vld [vmem:[#allocation5 + $0x1e4] ss:$16 sps:$4 sm:$0xff]  }
 0x136   :  { %2857 = vmatprep.subr.bf16.mxu0 %v4310_v45  ;;  %2939 = vmatprep.subr.bf16.mxu1 %v4313_v47  ;;  %v4398_v45 = vld [vmem:[#allocation5 + $0x1e0] ss:$16 sps:$4 sm:$0xff]   ;;  %v4401_v47 = vld [vmem:[#allocation5 + $0x1e8] ss:$16 sps:$4 sm:$0xff]  }
 0x138   :  { %1887 = vmatmul.mubr.bf16.vlgmr.msra.gmra.mrb[0].mxu0 %v171_v48  ;;  %2051 = vmatmul.mubr.bf16.vlgmr.msra.gmra.mrb[0].mxu1 %v171_v48  ;;  %v433_v48 = vsub.s32 0, %v4724_v46 }
 0x139   :  { %2858 = vmatpush1.bf16.msra.mxu0 %v4308_v36  ;;  %2940 = vmatpush1.bf16.msra.mxu1 %v4311_v37  ;;  %v4406_v36 = vld [vmem:[#allocation5 + $0x204] ss:$16 sps:$4 sm:$0xff]   ;;  %v4409_v37 = vld [vmem:[#allocation5 + $0x20c] ss:$16 sps:$4 sm:$0xff]  }
 0x13a   :  { %2859 = vmatprep.subr.bf16.mxu0 %v4316_v49  ;;  %2941 = vmatprep.subr.bf16.mxu1 %v4319_v50  ;;  %v4789_v49 = vld [vmem:[%s4837_s2] sm:$0xf]  ;;  %v437_v50 = vsub.s32 1, %v4724_v46 }
 0x13d   :  { %2860 = vmatpush1.bf16.msra.mxu0 %v4314_v12  ;;  %2942 = vmatpush1.bf16.msra.mxu1 %v4317_v13  ;;  %v445_v12 = vsub.s32 3, %v4724_v46  ;;  %v434_v13 = vrot.slane %v4789_v49, %v433_v48 }
 0x13e   :  { %2861 = vmatprep.subr.bf16.mxu0 %v4322_v51  ;;  %2943 = vmatprep.subr.bf16.mxu1 %v4325_v52  ;;  %v438_v51 = vrot.slane %v4789_v49, %v437_v50 }
 0x13f   :  { %v446_v52 = vrot.slane %v4789_v49, %v445_v12 }
 0x141   :  { %2862 = vmatpush1.bf16.msra.mxu0 %v4320_v54  ;;  %2944 = vmatpush1.bf16.msra.mxu1 %v4323_v55 }
 0x142   :  { %2863 = vmatprep.subr.bf16.mxu0 %v4328_v56  ;;  %2945 = vmatprep.subr.bf16.mxu1 %v4331_v57 }
 0x145   :  { %2864 = vmatpush1.bf16.msra.mxu0 %v4326_v58  ;;  %2946 = vmatpush1.bf16.msra.mxu1 %v4329_v59 }
 0x146   :  { %2865 = vmatprep.subr.bf16.mxu0 %v4334_v60  ;;  %2947 = vmatprep.subr.bf16.mxu1 %v4337_v61 }
 0x149   :  { %2866 = vmatpush1.bf16.msra.mxu0 %v4332_v62  ;;  %2948 = vmatpush1.bf16.msra.mxu1 %v4335_v63 }
 0x14a   :  { %2867 = vmatprep.subr.bf16.mxu0 %v4340_v0  ;;  %2949 = vmatprep.subr.bf16.mxu1 %v4343_v1 }
 0x14d   :  { %2868 = vmatpush1.bf16.msra.mxu0 %v4338_v2  ;;  %2950 = vmatpush1.bf16.msra.mxu1 %v4341_v3 }
 0x14e   :  { %2869 = vmatprep.subr.bf16.mxu0 %v4346_v4  ;;  %2951 = vmatprep.subr.bf16.mxu1 %v4349_v5  ;;  %v4404_v5 = vld [vmem:[#allocation5 + $0x200] ss:$16 sps:$4 sm:$0xff]  }
 0x151   :  { %2870 = vmatpush1.bf16.msra.mxu0 %v4344_v6  ;;  %2952 = vmatpush1.bf16.msra.mxu1 %v4347_v7  ;;  %v4407_v6 = vld [vmem:[#allocation5 + $0x208] ss:$16 sps:$4 sm:$0xff]  }
 0x152   :  { %2871 = vmatprep.subr.bf16.mxu0 %v4352_v8  ;;  %2953 = vmatprep.subr.bf16.mxu1 %v4355_v9  ;;  %v4412_v8 = vld [vmem:[#allocation5 + $0x224] ss:$16 sps:$4 sm:$0xff]   ;;  %v4415_v9 = vld [vmem:[#allocation5 + $0x22c] ss:$16 sps:$4 sm:$0xff]  }
 0x155   :  { %2872 = vmatpush1.bf16.msra.mxu0 %v4350_v10  ;;  %2954 = vmatpush1.bf16.msra.mxu1 %v4353_v11  ;;  %v4410_v11 = vld [vmem:[#allocation5 + $0x220] ss:$16 sps:$4 sm:$0xff]  }
 0x156   :  { %2873 = vmatprep.subr.bf16.mxu0 %v4358_v14  ;;  %2955 = vmatprep.subr.bf16.mxu1 %v4361_v15  ;;  %v4413_v14 = vld [vmem:[#allocation5 + $0x228] ss:$16 sps:$4 sm:$0xff]   ;;  %v4418_v15 = vld [vmem:[#allocation5 + $0x244] ss:$16 sps:$4 sm:$0xff]  }
 0x159   :  { %2874 = vmatpush1.bf16.msra.mxu0 %v4356_v16  ;;  %2956 = vmatpush1.bf16.msra.mxu1 %v4359_v17  ;;  %v4421_v16 = vld [vmem:[#allocation5 + $0x24c] ss:$16 sps:$4 sm:$0xff]   ;;  %v4416_v17 = vld [vmem:[#allocation5 + $0x240] ss:$16 sps:$4 sm:$0xff]  }
 0x15a   :  { %2875 = vmatprep.subr.bf16.mxu0 %v4364_v18  ;;  %2957 = vmatprep.subr.bf16.mxu1 %v4367_v19  ;;  %v4419_v18 = vld [vmem:[#allocation5 + $0x248] ss:$16 sps:$4 sm:$0xff]   ;;  %v4424_v19 = vld [vmem:[#allocation5 + $0x264] ss:$16 sps:$4 sm:$0xff]  }
 0x15d   :  { %2876 = vmatpush1.bf16.msra.mxu0 %v4362_v20  ;;  %2958 = vmatpush1.bf16.msra.mxu1 %v4365_v21  ;;  %v4427_v20 = vld [vmem:[#allocation5 + $0x26c] ss:$16 sps:$4 sm:$0xff]   ;;  %v4422_v21 = vld [vmem:[#allocation5 + $0x260] ss:$16 sps:$4 sm:$0xff]  }
 0x15e   :  { %2877 = vmatprep.subr.bf16.mxu0 %v4370_v22  ;;  %2959 = vmatprep.subr.bf16.mxu1 %v4373_v23  ;;  %v4425_v22 = vld [vmem:[#allocation5 + $0x268] ss:$16 sps:$4 sm:$0xff]   ;;  %v4430_v23 = vld [vmem:[#allocation5 + $0x284] ss:$16 sps:$4 sm:$0xff]  }
 0x161   :  { %2878 = vmatpush1.bf16.msra.mxu0 %v4368_v24  ;;  %2960 = vmatpush1.bf16.msra.mxu1 %v4371_v25  ;;  %v4433_v24 = vld [vmem:[#allocation5 + $0x28c] ss:$16 sps:$4 sm:$0xff]   ;;  %v4428_v25 = vld [vmem:[#allocation5 + $0x280] ss:$16 sps:$4 sm:$0xff]  }
 0x162   :  { %2879 = vmatprep.subr.bf16.mxu0 %v4376_v26  ;;  %2961 = vmatprep.subr.bf16.mxu1 %v4379_v27  ;;  %v4431_v26 = vld [vmem:[#allocation5 + $0x288] ss:$16 sps:$4 sm:$0xff]   ;;  %v4436_v27 = vld [vmem:[#allocation5 + $0x2a4] ss:$16 sps:$4 sm:$0xff]  }
 0x165   :  { %2880 = vmatpush1.bf16.msra.mxu0 %v4374_v28  ;;  %2962 = vmatpush1.bf16.msra.mxu1 %v4377_v29  ;;  %v4439_v28 = vld [vmem:[#allocation5 + $0x2ac] ss:$16 sps:$4 sm:$0xff]   ;;  %v4434_v29 = vld [vmem:[#allocation5 + $0x2a0] ss:$16 sps:$4 sm:$0xff]  }
 0x166   :  { %2881 = vmatprep.subr.bf16.mxu0 %v4382_v30  ;;  %2963 = vmatprep.subr.bf16.mxu1 %v4385_v31  ;;  %v4437_v30 = vld [vmem:[#allocation5 + $0x2a8] ss:$16 sps:$4 sm:$0xff]   ;;  %v4442_v31 = vld [vmem:[#allocation5 + $0x2c4] ss:$16 sps:$4 sm:$0xff]  }
 0x169   :  { %2882 = vmatpush1.bf16.msra.mxu0 %v4380_v32  ;;  %2964 = vmatpush1.bf16.msra.mxu1 %v4383_v33  ;;  %v4445_v32 = vld [vmem:[#allocation5 + $0x2cc] ss:$16 sps:$4 sm:$0xff]   ;;  %v4440_v33 = vld [vmem:[#allocation5 + $0x2c0] ss:$16 sps:$4 sm:$0xff]  }
 0x16a   :  { %2883 = vmatprep.subr.bf16.mxu0 %v4388_v34  ;;  %2965 = vmatprep.subr.bf16.mxu1 %v4391_v35  ;;  %v4443_v34 = vld [vmem:[#allocation5 + $0x2c8] ss:$16 sps:$4 sm:$0xff]   ;;  %v4448_v35 = vld [vmem:[#allocation5 + $0x2e4] ss:$16 sps:$4 sm:$0xff]  }
 0x16d   :  { %2884 = vmatpush1.bf16.msra.mxu0 %v4386_v38  ;;  %2966 = vmatpush1.bf16.msra.mxu1 %v4389_v39  ;;  %v4451_v38 = vld [vmem:[#allocation5 + $0x2ec] ss:$16 sps:$4 sm:$0xff]   ;;  %v4446_v39 = vld [vmem:[#allocation5 + $0x2e0] ss:$16 sps:$4 sm:$0xff]  }
 0x16e   :  { %2885 = vmatprep.subr.bf16.mxu0 %v4394_v40  ;;  %2967 = vmatprep.subr.bf16.mxu1 %v4397_v41  ;;  %v4449_v40 = vld [vmem:[#allocation5 + $0x2e8] ss:$16 sps:$4 sm:$0xff]   ;;  %v4454_v41 = vld [vmem:[#allocation5 + $0x304] ss:$16 sps:$4 sm:$0xff]  }
 0x171   :  { %2886 = vmatpush1.bf16.msra.mxu0 %v4392_v42  ;;  %2968 = vmatpush1.bf16.msra.mxu1 %v4395_v43  ;;  %v4457_v42 = vld [vmem:[#allocation5 + $0x30c] ss:$16 sps:$4 sm:$0xff]   ;;  %v4452_v43 = vld [vmem:[#allocation5 + $0x300] ss:$16 sps:$4 sm:$0xff]  }
 0x172   :  { %2887 = vmatprep.subr.bf16.mxu0 %v4400_v44  ;;  %2969 = vmatprep.subr.bf16.mxu1 %v4403_v53  ;;  %v4455_v44 = vld [vmem:[#allocation5 + $0x308] ss:$16 sps:$4 sm:$0xff]   ;;  %v4460_v53 = vld [vmem:[#allocation5 + $0x324] ss:$16 sps:$4 sm:$0xff]  }
 0x175   :  { %2888 = vmatpush1.bf16.msra.mxu0 %v4398_v45  ;;  %2970 = vmatpush1.bf16.msra.mxu1 %v4401_v47  ;;  %v4463_v45 = vld [vmem:[#allocation5 + $0x32c] ss:$16 sps:$4 sm:$0xff]   ;;  %v4458_v47 = vld [vmem:[#allocation5 + $0x320] ss:$16 sps:$4 sm:$0xff]  }
 0x176   :  { %2898 = vmatprep.subr.bf16.mxu0 %v4406_v36  ;;  %2980 = vmatprep.subr.bf16.mxu1 %v4409_v37  ;;  %v4461_v36 = vld [vmem:[#allocation5 + $0x328] ss:$16 sps:$4 sm:$0xff]   ;;  %v4466_v37 = vld [vmem:[#allocation5 + $0x344] ss:$16 sps:$4 sm:$0xff]  }
 0x20b   :  { %v1888_v54 = vpop.f32.mrb[0].mxu0  ;;  %v4802_v55 = vpop.f32.mrb[0].mxu1 }
 0x20c   :  { %v3861_v56 = vadd.f32 %v1888_v54, %v434_v13  ;;  %v1890_v57 = vpop.f32.mrb[1].mxu0  ;;  %v2054_v58 = vpop.f32.mrb[1].mxu1  ;;  %v4469_v13 = vld [vmem:[#allocation5 + $0x34c] ss:$16 sps:$4 sm:$0xff]   ;;  %v4472_v54 = vld [vmem:[#allocation5 + $0x364] ss:$16 sps:$4 sm:$0xff]  }
 0x20d   :  { %v3862_v59 = vadd.f32 %v1890_v57, %v438_v51  ;;  %v3864_v60 = vadd.f32 %v2054_v58, %v446_v52  ;;  %v1892_v61 = vpop.f32.mrb[2].mxu0  ;;  %v2056_v62 = vpop.f32.mrb[2].mxu1  ;;  %v4464_v51 = vld [vmem:[#allocation5 + $0x340] ss:$16 sps:$4 sm:$0xff]   ;;  %v4467_v52 = vld [vmem:[#allocation5 + $0x348] ss:$16 sps:$4 sm:$0xff]  }
 0x20e   :  { %v2059_v63 = vmax.f32 %v3861_v56, 0.0  ;;  %v1893_v0 = vpop.f32.mrb[3].mxu0  ;;  %v2057_v1 = vpop.f32.mrb[3].mxu1  ;;  %v4475_v56 = vld [vmem:[#allocation5 + $0x36c] ss:$16 sps:$4 sm:$0xff]  }
 0x20f   :  { %v2060_v2 = vmax.f32 %v3862_v59, 0.0  ;;  %v2062_v3 = vmax.f32 %v3864_v60, 0.0  ;;  %v4470_v57 = vld [vmem:[#allocation5 + $0x360] ss:$16 sps:$4 sm:$0xff]   ;;  %v4473_v58 = vld [vmem:[#allocation5 + $0x368] ss:$16 sps:$4 sm:$0xff]  }
 0x210   :  { %v2063_v7 = vpack.c.bf16 %v2059_v63, %v2059_v63  ;;  %v4478_v59 = vld [vmem:[#allocation5 + $0x384] ss:$16 sps:$4 sm:$0xff]   ;;  %v4481_v60 = vld [vmem:[#allocation5 + $0x38c] ss:$16 sps:$4 sm:$0xff]   ;;  %v4476_v61 = vld [vmem:[#allocation5 + $0x380] ss:$16 sps:$4 sm:$0xff]  }
 0x211   :  { %v2064_v4 = vpack.c.bf16 %v2060_v2, %v2060_v2  ;;  %v2066_v10 = vpack.c.bf16 %v2062_v3, %v2062_v3  ;;  %v4479_v62 = vld [vmem:[#allocation5 + $0x388] ss:$16 sps:$4 sm:$0xff]   ;;  %v441_v63 = vsub.s32 2, %v4724_v46  ;;  %v4484_v0 = vld [vmem:[#allocation5 + $0x3a4] ss:$16 sps:$4 sm:$0xff]  }
 0x212   :  { %v4487_v1 = vld [vmem:[#allocation5 + $0x3ac] ss:$16 sps:$4 sm:$0xff]   ;;  %v4482_v2 = vld [vmem:[#allocation5 + $0x3a0] ss:$16 sps:$4 sm:$0xff]   ;;  %v4485_v3 = vld [vmem:[#allocation5 + $0x3a8] ss:$16 sps:$4 sm:$0xff]  }
 0x213   :  { %2889 = vmatprep.mubr.bf16.mxu0 %v2064_v4  ;;  %2971 = vmatprep.mubr.bf16.mxu1 %v2064_v4  ;;  %v442_v4 = vrot.slane %v4789_v49, %v441_v63  ;;  %v4500_v49 = vld [vmem:[#allocation7 + $0x40] sm:$0xff]  }
 0x214   :  { %2890 = vmatmul.mubr.bf16.vlgmr.msra.gmra.mrb[4].mxu0 %v2063_v7  ;;  %2972 = vmatmul.mubr.bf16.vlgmr.msra.gmra.mrb[4].mxu1 %v2063_v7  ;;  %v4488_v7 = vld [vmem:[#allocation5 + $0x3c0] ss:$16 sps:$4 sm:$0xff]  }
 0x215   :  { %2899 = vmatpush1.bf16.msra.mxu0 %v4404_v5  ;;  %2981 = vmatpush1.bf16.msra.mxu1 %v4407_v6  ;;  %v4490_v5 = vld [vmem:[#allocation5 + $0x3c4] ss:$16 sps:$4 sm:$0xff]   ;;  %v4493_v6 = vld [vmem:[#allocation5 + $0x3cc] ss:$16 sps:$4 sm:$0xff]  }
 0x216   :  { %2930 = vmatprep.mubr.bf16.mxu0 %v2066_v10  ;;  %3012 = vmatprep.mubr.bf16.mxu1 %v2066_v10  ;;  %v4496_v10 = vld [vmem:[#allocation5 + $0x3e4] ss:$16 sps:$4 sm:$0xff]  }
 0x217   :  { %2900 = vmatprep.subr.bf16.mxu0 %v4412_v8  ;;  %2982 = vmatprep.subr.bf16.mxu1 %v4415_v9  ;;  %v4491_v8 = vld [vmem:[#allocation5 + $0x3c8] ss:$16 sps:$4 sm:$0xff]   ;;  %v3863_v9 = vadd.f32 %v4802_v55, %v442_v4 }
 0x218   :  { %v4504_v55 = vld [vmem:[#allocation7 + $0x48] sm:$0xff]  }
 0x219   :  { %2901 = vmatpush1.bf16.msra.mxu0 %v4410_v11  ;;  %2983 = vmatpush1.bf16.msra.mxu1 %v4413_v14  ;;  %v4499_v11 = vld [vmem:[#allocation5 + $0x3ec] ss:$16 sps:$4 sm:$0xff]   ;;  %v4494_v14 = vld [vmem:[#allocation5 + $0x3e0] ss:$16 sps:$4 sm:$0xff]  }
 0x21a   :  { %2902 = vmatprep.subr.bf16.mxu0 %v4418_v15  ;;  %2984 = vmatprep.subr.bf16.mxu1 %v4421_v16  ;;  %v4497_v15 = vld [vmem:[#allocation5 + $0x3e8] ss:$16 sps:$4 sm:$0xff]   ;;  %v2061_v16 = vmax.f32 %v3863_v9, 0.0 }
 0x21d   :  { %2903 = vmatpush1.bf16.msra.mxu0 %v4416_v17  ;;  %2985 = vmatpush1.bf16.msra.mxu1 %v4419_v18  ;;  %v4501_v17 = vld [vmem:[#allocation7 + $0xc0] sm:$0xff]  }
 0x21e   :  { %2904 = vmatprep.subr.bf16.mxu0 %v4424_v19  ;;  %2986 = vmatprep.subr.bf16.mxu1 %v4427_v20  ;;  %v4502_v18 = vld [vmem:[#allocation7] sm:$0xff]   ;;  %v2065_v20 = vpack.c.bf16 %v2061_v16, %v2061_v16 }
 0x21f   :  { %v4503_v19 = vld [vmem:[#allocation7 + $0x80] sm:$0xff]  }
 0x221   :  { %2905 = vmatpush1.bf16.msra.mxu0 %v4422_v21  ;;  %2987 = vmatpush1.bf16.msra.mxu1 %v4425_v22  ;;  %v4505_v21 = vld [vmem:[#allocation7 + $0xc8] sm:$0xff]  }
 0x222   :  { %2906 = vmatprep.subr.bf16.mxu0 %v4430_v23  ;;  %2988 = vmatprep.subr.bf16.mxu1 %v4433_v24  ;;  %v4506_v22 = vld [vmem:[#allocation7 + $0x8] sm:$0xff]   ;;  %v4508_v24 = vld [vmem:[#allocation7 + $0x50] sm:$0xff]  }
 0x223   :  { %v4507_v23 = vld [vmem:[#allocation7 + $0x88] sm:$0xff]  }
 0x225   :  { %2907 = vmatpush1.bf16.msra.mxu0 %v4428_v25  ;;  %2989 = vmatpush1.bf16.msra.mxu1 %v4431_v26  ;;  %v4509_v25 = vld [vmem:[#allocation7 + $0xd0] sm:$0xff]  }
 0x226   :  { %2908 = vmatprep.subr.bf16.mxu0 %v4436_v27  ;;  %2990 = vmatprep.subr.bf16.mxu1 %v4439_v28  ;;  %v4510_v26 = vld [vmem:[#allocation7 + $0x10] sm:$0xff]   ;;  %v4512_v28 = vld [vmem:[#allocation7 + $0x58] sm:$0xff]  }
 0x227   :  { %v4511_v27 = vld [vmem:[#allocation7 + $0x90] sm:$0xff]  }
 0x229   :  { %2909 = vmatpush1.bf16.msra.mxu0 %v4434_v29  ;;  %2991 = vmatpush1.bf16.msra.mxu1 %v4437_v30  ;;  %v4513_v29 = vld [vmem:[#allocation7 + $0xd8] sm:$0xff]  }
 0x22a   :  { %2910 = vmatprep.subr.bf16.mxu0 %v4442_v31  ;;  %2992 = vmatprep.subr.bf16.mxu1 %v4445_v32  ;;  %v4514_v30 = vld [vmem:[#allocation7 + $0x18] sm:$0xff]   ;;  %v4516_v32 = vld [vmem:[#allocation7 + $0x60] sm:$0xff]  }
 0x22b   :  { %v4515_v31 = vld [vmem:[#allocation7 + $0x98] sm:$0xff]  }
 0x22d   :  { %2911 = vmatpush1.bf16.msra.mxu0 %v4440_v33  ;;  %2993 = vmatpush1.bf16.msra.mxu1 %v4443_v34  ;;  %v4517_v33 = vld [vmem:[#allocation7 + $0xe0] sm:$0xff]  }
 0x22e   :  { %2912 = vmatprep.subr.bf16.mxu0 %v4448_v35  ;;  %2994 = vmatprep.subr.bf16.mxu1 %v4451_v38  ;;  %v4518_v34 = vld [vmem:[#allocation7 + $0x20] sm:$0xff]   ;;  %v4520_v38 = vld [vmem:[#allocation7 + $0x68] sm:$0xff]  }
 0x22f   :  { %v4519_v35 = vld [vmem:[#allocation7 + $0xa0] sm:$0xff]  }
 0x231   :  { %2913 = vmatpush1.bf16.msra.mxu0 %v4446_v39  ;;  %2995 = vmatpush1.bf16.msra.mxu1 %v4449_v40  ;;  %v4521_v39 = vld [vmem:[#allocation7 + $0xe8] sm:$0xff]  }
 0x232   :  { %2914 = vmatprep.subr.bf16.mxu0 %v4454_v41  ;;  %2996 = vmatprep.subr.bf16.mxu1 %v4457_v42  ;;  %v4522_v40 = vld [vmem:[#allocation7 + $0x28] sm:$0xff]   ;;  %v4524_v42 = vld [vmem:[#allocation7 + $0x70] sm:$0xff]  }
 0x233   :  { %v4523_v41 = vld [vmem:[#allocation7 + $0xa8] sm:$0xff]  }
 0x235   :  { %2915 = vmatpush1.bf16.msra.mxu0 %v4452_v43  ;;  %2997 = vmatpush1.bf16.msra.mxu1 %v4455_v44  ;;  %v4525_v43 = vld [vmem:[#allocation7 + $0xf0] sm:$0xff]  }
 0x236   :  { %2916 = vmatprep.subr.bf16.mxu0 %v4460_v53  ;;  %2998 = vmatprep.subr.bf16.mxu1 %v4463_v45  ;;  %v4526_v44 = vld [vmem:[#allocation7 + $0x30] sm:$0xff]   ;;  %v4528_v45 = vld [vmem:[#allocation7 + $0x78] sm:$0xff]  }
 0x237   :  { %v4527_v53 = vld [vmem:[#allocation7 + $0xb0] sm:$0xff]  }
 0x239   :  { %2917 = vmatpush1.bf16.msra.mxu0 %v4458_v47  ;;  %2999 = vmatpush1.bf16.msra.mxu1 %v4461_v36  ;;  %v4529_v47 = vld [vmem:[#allocation7 + $0xf8] sm:$0xff]  }
 0x23a   :  { %2918 = vmatprep.subr.bf16.mxu0 %v4466_v37  ;;  %3000 = vmatprep.subr.bf16.mxu1 %v4469_v13  ;;  %v4530_v36 = vld [vmem:[#allocation7 + $0x38] sm:$0xff]   ;;  %v2195_v13 = vld [vmem:[%s4839_s4] sm:$0xf] }
 0x23b   :  { %v4531_v37 = vld [vmem:[#allocation7 + $0xb8] sm:$0xff]  }
 0x23d   :  { %2919 = vmatpush1.bf16.msra.mxu0 %v4464_v51  ;;  %3001 = vmatpush1.bf16.msra.mxu1 %v4467_v52  ;;  %v2200_v51 = vrot.slane %v2195_v13, %v433_v48  ;;  %v2208_v52 = vrot.slane %v2195_v13, %v441_v63 }
 0x23e   :  { %2920 = vmatprep.subr.bf16.mxu0 %v4472_v54  ;;  %3002 = vmatprep.subr.bf16.mxu1 %v4475_v56  ;;  %v2204_v54 = vrot.slane %v2195_v13, %v437_v50  ;;  %v2212_v56 = vrot.slane %v2195_v13, %v445_v12 }
 0x241   :  { %2921 = vmatpush1.bf16.msra.mxu0 %v4470_v57  ;;  %3003 = vmatpush1.bf16.msra.mxu1 %v4473_v58 }
 0x242   :  { %2922 = vmatprep.subr.bf16.mxu0 %v4478_v59  ;;  %3004 = vmatprep.subr.bf16.mxu1 %v4481_v60 }
 0x245   :  { %2923 = vmatpush1.bf16.msra.mxu0 %v4476_v61  ;;  %3005 = vmatpush1.bf16.msra.mxu1 %v4479_v62 }
 0x246   :  { %2924 = vmatprep.subr.bf16.mxu0 %v4484_v0  ;;  %3006 = vmatprep.subr.bf16.mxu1 %v4487_v1 }
 0x249   :  { %2925 = vmatpush1.bf16.msra.mxu0 %v4482_v2  ;;  %3007 = vmatpush1.bf16.msra.mxu1 %v4485_v3 }
 0x24a   :  { %2926 = vmatprep.subr.bf16.mxu0 %v4490_v5  ;;  %3008 = vmatprep.subr.bf16.mxu1 %v4493_v6 }
 0x24d   :  { %2927 = vmatpush1.bf16.msra.mxu0 %v4488_v7  ;;  %3009 = vmatpush1.bf16.msra.mxu1 %v4491_v8 }
 0x24e   :  { %2928 = vmatprep.subr.bf16.mxu0 %v4496_v10  ;;  %3010 = vmatprep.subr.bf16.mxu1 %v4499_v11  ;;  %v3784_v11 = vld [vmem:[%s4841_s6] ss:$0 sm:$0xff] }
 0x251   :  { %2929 = vmatpush1.bf16.msra.mxu0 %v4494_v14  ;;  %3011 = vmatpush1.bf16.msra.mxu1 %v4497_v15 }
 0x252   :  { %3817 = vmatprep.subr.bf16.mxu0 %v4500_v49  ;;  %3839 = vmatprep.subr.bf16.mxu1 %v4501_v17 }
 0x254   :  { %2931 = vmatmul.mubr.bf16.vlgmr.msra.gmra.mrb[4].mxu0 %v2065_v20  ;;  %3013 = vmatmul.mubr.bf16.vlgmr.msra.gmra.mrb[4].mxu1 %v2065_v20 }
 0x255   :  { %3818 = vmatpush3.bf16.msra.mxu0 %v4502_v18  ;;  %3840 = vmatpush3.bf16.msra.mxu1 %v4503_v19 }
 0x256   :  { %3819 = vmatprep.subr.bf16.mxu0 %v4504_v55  ;;  %3841 = vmatprep.subr.bf16.mxu1 %v4505_v21 }
 0x259   :  { %3820 = vmatpush3.bf16.msra.mxu0 %v4506_v22  ;;  %3842 = vmatpush3.bf16.msra.mxu1 %v4507_v23 }
 0x25a   :  { %3821 = vmatprep.subr.bf16.mxu0 %v4508_v24  ;;  %3843 = vmatprep.subr.bf16.mxu1 %v4509_v25 }
 0x25d   :  { %3822 = vmatpush3.bf16.msra.mxu0 %v4510_v26  ;;  %3844 = vmatpush3.bf16.msra.mxu1 %v4511_v27 }
 0x25e   :  { %3823 = vmatprep.subr.bf16.mxu0 %v4512_v28  ;;  %3845 = vmatprep.subr.bf16.mxu1 %v4513_v29 }
 0x261   :  { %3824 = vmatpush3.bf16.msra.mxu0 %v4514_v30  ;;  %3846 = vmatpush3.bf16.msra.mxu1 %v4515_v31 }
 0x262   :  { %3825 = vmatprep.subr.bf16.mxu0 %v4516_v32  ;;  %3847 = vmatprep.subr.bf16.mxu1 %v4517_v33 }
 0x265   :  { %3826 = vmatpush3.bf16.msra.mxu0 %v4518_v34  ;;  %3848 = vmatpush3.bf16.msra.mxu1 %v4519_v35 }
 0x266   :  { %3827 = vmatprep.subr.bf16.mxu0 %v4520_v38  ;;  %3849 = vmatprep.subr.bf16.mxu1 %v4521_v39 }
 0x269   :  { %3828 = vmatpush3.bf16.msra.mxu0 %v4522_v40  ;;  %3850 = vmatpush3.bf16.msra.mxu1 %v4523_v41 }
 0x26a   :  { %3829 = vmatprep.subr.bf16.mxu0 %v4524_v42  ;;  %3851 = vmatprep.subr.bf16.mxu1 %v4525_v43 }
 0x26d   :  { %3830 = vmatpush3.bf16.msra.mxu0 %v4526_v44  ;;  %3852 = vmatpush3.bf16.msra.mxu1 %v4527_v53 }
 0x26e   :  { %3831 = vmatprep.subr.bf16.mxu0 %v4528_v45  ;;  %3853 = vmatprep.subr.bf16.mxu1 %v4529_v47 }
 0x271   :  { %3832 = vmatpush3.bf16.msra.mxu0 %v4530_v36  ;;  %3854 = vmatpush3.bf16.msra.mxu1 %v4531_v37 }
 0x327   :  { %v2932_v57 = vpop.f32.mrb[4].mxu0  ;;  %v3014_v58 = vpop.f32.mrb[4].mxu1 }
 0x328   :  { %v3865_v59 = vadd.f32 %v2932_v57, %v2200_v51  ;;  %v3867_v60 = vadd.f32 %v3014_v58, %v2208_v52  ;;  %v2934_v61 = vpop.f32.mrb[5].mxu0  ;;  %v3016_v62 = vpop.f32.mrb[5].mxu1 }
 0x329   :  { %v3866_v0 = vadd.f32 %v2934_v61, %v2204_v54  ;;  %v3868_v1 = vadd.f32 %v3016_v62, %v2212_v56  ;;  %v2936_v2 = vpop.f32.mrb[6].mxu0  ;;  %v3018_v3 = vpop.f32.mrb[6].mxu1 }
 0x32a   :  { %v3021_v48 = vmax.f32 %v3865_v59, 0.0  ;;  %v3023_v4 = vmax.f32 %v3867_v60, 0.0  ;;  %v2937_v5 = vpop.f32.mrb[7].mxu0  ;;  %v3019_v63 = vpop.f32.mrb[7].mxu1 }
 0x32b   :  { %v3022_v6 = vmax.f32 %v3866_v0, 0.0  ;;  %v3024_v7 = vmax.f32 %v3868_v1, 0.0 }
 0x32c   :  { %v3025_v46 = vpack.c.bf16 %v3021_v48, %v3021_v48  ;;  %v3027_v12 = vpack.c.bf16 %v3023_v4, %v3023_v4 }
 0x32d   :  { %v3026_v50 = vpack.c.bf16 %v3022_v6, %v3022_v6  ;;  %v3028_v8 = vpack.c.bf16 %v3024_v7, %v3024_v7 }
 0x32f   :  { %3324 = vmatprep.mubr.bf16.mxu0 %v3026_v50  ;;  %3364 = vmatprep.mubr.bf16.mxu1 %v3028_v8 }
 0x330   :  { %3325 = vmatmul.mubr.bf16.vlgmr.msra.gmra.mrb[8].mxu0 %v3025_v46  ;;  %3365 = vmatmul.mubr.bf16.vlgmr.msra.gmra.mrb[8].mxu1 %v3027_v12 }
 0x403   :  { %v3833_v9 = vpop.f32.mrb[8].mxu0  ;;  %v3855_v10 = vpop.f32.mrb[8].mxu1 }
 0x404   :  { %v3834_v14 = vpop.f32.mrb[9].mxu0  ;;  %v3856_v15 = vpop.f32.mrb[9].mxu1 }
 0x405   :  { %v3835_v16 = vadd.f32 %v3834_v14, %v3833_v9  ;;  %v3857_v49 = vadd.f32 %v3856_v15, %v3855_v10  ;;  %v3836_v17 = vpop.f32.mrb[10].mxu0  ;;  %v3858_v18 = vpop.f32.mrb[10].mxu1 }
 0x406   :  { %v3837_v19 = vpop.f32.mrb[11].mxu0  ;;  %v3859_v20 = vpop.f32.mrb[11].mxu1 }
 0x407   :  { %v3327_v55 = vadd.f32 %v3835_v16, %v3784_v11 }
 0x409   :  { %v3367_v21 = vadd.f32 %v3857_v49, %v3327_v55 }
 0x40b   :  { %3372 = vmax.xlane.f32.xlu0 %v3367_v21 }
 0x498   :  { %v3373_v22 = vpop.xlane.xlu0 %3372 }
 0x499   :  { %v3374_v23 = vsub.f32 %v3367_v21, %v3373_v22 }
 0x49b   :  { %v3375_v24 = vmul.f32 1.442695, %v3374_v23 }
 0x49d   :  { %4532 = vpow2.f32 %v3375_v24 }
 0x4a7   :  { %v4533_v25 = vpop.eup %4532 }
 0x4a8   :  { %3377 = vadd.xlane.f32.xlu0 %v4533_v25 }
 0x535   :  { %v3378_v26 = vpop.xlane.xlu0 %3377 }
 0x536   :  { %4534 = vrcp.f32 %v3378_v26 }
 0x540   :  { %v4535_v27 = vpop.eup %4534 }
 0x541   :  { %v3380_v28 = vmul.f32 %v4535_v27, %v4533_v25 }
 0x543   :  { %3381 = vst [vmem:[#allocation8] sm:$0xff] %v3380_v28 }
 0x544   :  { %3386 = vsyncadd [#allocation4], 96  ;;  %s4638_s6 = smov [#allocation8]  }
 0x545   :  { %s3387_s11 = sshll.u32 %s4638_s6, 4  ;;  %s3388_s11 = int_to_ptr.vmem [resolvable:$true] %s3387_s11 }
 0x546   :  { %s4602_s12 = scalar_lea.vmem %s3388_s11, 32  ;;  %s4606_s15 = scalar_lea.vmem %s3388_s11, 128 }
 0x547   :  { %p4603_p10 = scmp.ne.s32.totalorder %s3388_s11, %s4602_s12  ;;  %p4607_p11 = scmp.lt.s32.totalorder %s3388_s11, %s3388_s11 }
 0x548   :  { %p4608_p12 = scmp.lt.s32.totalorder %s4606_s15, %s4602_s12 }
 0x54a   :  { %p4609_p13 = por %p4608_p12, %p4607_p11 }
 0x54c   :  { %p4610_p0 = pnand %p4609_p13, %p4603_p10 }
 0x54e   :  { %4613 = shalt.err (!%p4610_p0)
}
 0x54f   :  { %s4614_s13 = scalar_lea.hbm %s4842_s7, 32 }
 0x550   :  { %p4615_p1 = scmp.ne.s32.totalorder %s4842_s7, %s4614_s13  ;;  %p4618_p2 = scmp.lt.u32.totalorder %s4614_s13, %s4842_s7 }
 0x552   :  { %p4620_p3 = pnand %p4618_p2, %p4615_p1 }
 0x554   :  { %4623 = shalt.err (!%p4620_p3)
}
 0x555   :  { %s4639_s18 = smov 32   ;;  %s4640_s19 = smov 2  }
 0x556   :  { %3393 = dma.vmem_to_hbm [thread:$0]  %s3388_s11, 32, %s4842_s7, [#allocation4], %s4639_s18, %s4639_s18, %s4640_s19  }
 0x557   :  { %4628 = dma.done.wait [#allocation4], 128  }
 0x558   :  { %4629 = vsyncadd [#allocation4], 4294967168 }
 0x559   :  { %3397 = vsyncpa [#allocation3], 1 }
 0x55a   :  { %3398 = vsyncpa [#allocation6], 1 }
 0x55b   :  { %3399 = vsyncpa [#allocation4], 1 }

</bundles_post_ra>
